<compile_context>
chip_gen: v7x
topology: tpu7x:2x2x1
jax: 0.10.0
libtpu: 0.0.40
codegen_flags: <defaults>
</compile_context>

<pallas_src>
import functools
import math

import numpy as np
import jax
import jax.numpy as jnp
from jax.experimental import pallas as pl
from jax.experimental.pallas import tpu as pltpu

LN_EPS = 1e-5  # PyTorch LayerNorm default eps


def _layernorm(x, g, b):
    mu = jnp.mean(x, axis=-1, keepdims=True)
    var = jnp.mean((x - mu) ** 2, axis=-1, keepdims=True)
    return (x - mu) * jax.lax.rsqrt(var + LN_EPS) * g + b


# ------------------------------ fused kernel --------------------------------

def bert_fused_kernel(x_ref, pe_ref, kbias_ref, we_ref, be_ref,
                      wqkv_ref, bqkv_ref, wo_ref, bo_ref,
                      w1_ref, b1_ref, w2_ref, b2_ref,
                      ln1g_ref, ln1b_ref, ln2g_ref, ln2b_ref,
                      lnfg_ref, lnfb_ref,
                      o_ref, *, num_heads):
    l = pl.program_id(1)                       # layer axis (innermost, arbitrary)
    bt, S, H = o_ref.shape
    R = bt * S
    hd = H // num_heads

    # ---- embedding (first layer step of each row tile) ----
    @pl.when(l == 0)
    def _embed():
        fin = x_ref.shape[-1]
        emb = jnp.dot(x_ref[...].reshape(R, fin), we_ref[...],
                      preferred_element_type=jnp.float32)
        o_ref[...] = (emb + be_ref[...] + pe_ref[...].reshape(R, H)
                      ).reshape(bt, S, H)

    # o_ref holds the previous layer's (or embedding's) activation; the output
    # block index is constant across the layer axis so it stays VMEM-resident.
    x = o_ref[...].reshape(R, H)               # (R, H) float32

    # ---- multi-head self-attention ----
    # Fused QKV projection: one (R,H)@(H,3H) MXU matmul, bf16 in / f32 acc.
    # The 1/sqrt(hd) attention scale is already folded into the Q weights.
    qkv = jnp.dot(x.astype(jnp.bfloat16), wqkv_ref[0],
                  preferred_element_type=jnp.float32) + bqkv_ref[0]
    qkv = qkv.astype(jnp.bfloat16)

    kbias = kbias_ref[...]                     # (bt, 1, S) additive key mask

    # Per-batch attention (block-diagonal by construction): each head does a
    # batched (bt, S, hd) x (bt, S, hd) -> (bt, S, S) score matmul.
    ctx_heads = []
    for h in range(num_heads):
        qh = qkv[:, h * hd:(h + 1) * hd].reshape(bt, S, hd)
        kh = qkv[:, H + h * hd:H + (h + 1) * hd].reshape(bt, S, hd)
        vh = qkv[:, 2 * H + h * hd:2 * H + (h + 1) * hd].reshape(bt, S, hd)

        s = jax.lax.dot_general(qh, kh, (((2,), (2,)), ((0,), (0,))),
                                preferred_element_type=jnp.float32)
        s = s + kbias                          # key-padding bias (0 / -1e9)
        s = s - jnp.max(s, axis=-1, keepdims=True)
        p = jnp.exp(s)
        p = p * pl.reciprocal(jnp.sum(p, axis=-1, keepdims=True), approx=True)
        ctx_h = jax.lax.dot_general(p.astype(jnp.bfloat16), vh,
                                    (((2,), (1,)), ((0,), (0,))),
                                    preferred_element_type=jnp.float32)
        ctx_heads.append(ctx_h.reshape(R, hd))

    # Concatenate head contexts along lanes (no VMEM scratch round-trip), then
    # one full-K output projection.
    ctx = jnp.concatenate(ctx_heads, axis=-1).astype(jnp.bfloat16)
    attn = jnp.dot(ctx, wo_ref[0], preferred_element_type=jnp.float32) + bo_ref[0]
    x = _layernorm(x + attn, ln1g_ref[0], ln1b_ref[0])

    # ---- feed-forward (ReLU), intermediate emitted directly in bf16 ----
    h1 = jnp.maximum(
        jnp.dot(x.astype(jnp.bfloat16), w1_ref[0],
                preferred_element_type=jnp.float32) + b1_ref[0],
        0.0).astype(jnp.bfloat16)
    ff = jnp.dot(h1, w2_ref[0], preferred_element_type=jnp.float32) + b2_ref[0]
    x = _layernorm(x + ff, ln2g_ref[0], ln2b_ref[0])

    is_last = l == pl.num_programs(1) - 1

    @pl.when(jnp.logical_not(is_last))
    def _store():
        o_ref[...] = x.reshape(bt, S, H)

    # ---- final encoder norm on the last layer step ----
    @pl.when(is_last)
    def _final_norm():
        o_ref[...] = _layernorm(x, lnfg_ref[...], lnfb_ref[...]).reshape(bt, S, H)


# --------------------------- wrapper / glue ----------------------------------

def _const_spec(shape):
    n = len(shape)
    return pl.BlockSpec(shape, lambda r, l, _n=n: (0,) * _n)


def _batch_spec(shape, bt):
    rest = tuple(shape[1:])
    return pl.BlockSpec((bt,) + rest, lambda r, l, _n=len(rest): (r,) + (0,) * _n)


def _layer_spec(shape):
    rest = tuple(shape[1:])
    return pl.BlockSpec((1,) + rest, lambda r, l, _n=len(rest): (l,) + (0,) * _n)


_CP = pltpu.CompilerParams(
    # row-tile axis is parallel (exact: attention is per batch element),
    # layer axis is sequential.
    dimension_semantics=("parallel", "arbitrary"),
    vmem_limit_bytes=48 * 1024 * 1024,   # headroom vs v7x 64 MiB per-TC VMEM
)


def bert_forward(x, doy, mask, params, batch_tile=None):
    B, S, Fin = x.shape
    H = params["we"].shape[1]
    nh = params["attn_heads"]
    n_layers = params["wqkv"].shape[0]
    assert H % nh == 0
    # NOTE: for production configs H (and 3H, 4H) should be multiples of 128
    # for lane-dense blocks; the tiny demo below uses H=32.

    if batch_tile is None:
        batch_tile = B
    assert B % batch_tile == 0
    n_row_tiles = B // batch_tile

    x_in = x.astype(jnp.bfloat16)                        # (B, S, Fin)
    pe = params["pe_table"][doy]                         # (B, S, H) f32, DOY PE
    # Additive key-padding bias, O(B*S) (mask == 0 -> key ignored, PyTorch
    # src_key_padding_mask semantics).  -1e9 underflows to exactly 0 after the
    # row-max subtraction.
    kbias = jnp.where(mask != 0, 0.0, -1e9).astype(jnp.float32).reshape(B, 1, S)

    operands = (x_in, pe, kbias, params["we"], params["be"],
                params["wqkv"], params["bqkv"], params["wo"], params["bo"],
                params["w1"], params["b1"], params["w2"], params["b2"],
                params["ln1g"], params["ln1b"], params["ln2g"], params["ln2b"],
                params["lnfg"], params["lnfb"])

    in_specs = [_batch_spec(tuple(o.shape), batch_tile) for o in operands[:3]]
    in_specs += [_const_spec(tuple(o.shape)) for o in operands[3:5]]    # we, be
    in_specs += [_layer_spec(tuple(o.shape)) for o in operands[5:-2]]   # per-layer
    in_specs += [_const_spec(tuple(o.shape)) for o in operands[-2:]]    # lnfg/lnfb

    out = pl.pallas_call(
        functools.partial(bert_fused_kernel, num_heads=nh),
        out_shape=jax.ShapeDtypeStruct((B, S, H), jnp.float32),
        grid=(n_row_tiles, n_layers),
        in_specs=in_specs,
        # Constant block index across the layer axis => each row tile's
        # activation stays resident in VMEM for the whole network, single
        # HBM writeback per row tile.
        out_specs=pl.BlockSpec((batch_tile, S, H), lambda r, l: (r, 0, 0)),
        compiler_params=_CP,
    )(*operands)
    return out


def init_params(key, num_features, hidden, n_layers, attn_heads):
    assert hidden % attn_heads == 0
    ffh = hidden * 4
    hd = hidden // attn_heads
    q_scale = 1.0 / math.sqrt(hd)

    def nrm(k, shape, scale=0.02):
        return (scale * jax.random.normal(k, shape, dtype=jnp.float32)
                ).astype(jnp.bfloat16)

    keys = jax.random.split(key, 5)
    params = {"attn_heads": attn_heads}

    # Embedding projection (bf16 weights) and sinusoidal DOY table (f32).
    params["we"] = nrm(keys[0], (num_features, hidden))
    params["be"] = jnp.zeros((1, hidden), jnp.float32)
    max_len = 367
    pos = np.arange(max_len)[:, None].astype(np.float32)
    div = np.exp(np.arange(0, hidden, 2).astype(np.float32)
                 * (-np.log(10000.0) / hidden))
    pe = np.zeros((max_len, hidden), np.float32)
    pe[:, 0::2] = np.sin(pos * div)
    pe[:, 1::2] = np.cos(pos * div)
    params["pe_table"] = jnp.asarray(pe)

    # Per-layer weights stacked along a leading layer axis (bf16 matmul weights,
    # f32 biases / LayerNorm params).  The 1/sqrt(head_dim) attention scale is
    # folded into the Q projection (weight + bias) here; a PyTorch weight
    # converter must apply the same fold.
    wqkv = 0.02 * jax.random.normal(keys[1], (n_layers, hidden, 3 * hidden),
                                    dtype=jnp.float32)
    wqkv = wqkv.at[:, :, :hidden].multiply(q_scale)
    params["wqkv"] = wqkv.astype(jnp.bfloat16)
    bqkv = jnp.zeros((n_layers, 1, 3 * hidden), jnp.float32)
    params["bqkv"] = bqkv.at[:, :, :hidden].multiply(q_scale)

    params["wo"] = nrm(keys[2], (n_layers, hidden, hidden))
    params["bo"] = jnp.zeros((n_layers, 1, hidden), jnp.float32)
    params["w1"] = nrm(keys[3], (n_layers, hidden, ffh))
    params["b1"] = jnp.zeros((n_layers, 1, ffh), jnp.float32)
    params["w2"] = nrm(keys[4], (n_layers, ffh, hidden))
    params["b2"] = jnp.zeros((n_layers, 1, hidden), jnp.float32)
    params["ln1g"] = jnp.ones((n_layers, 1, hidden), jnp.float32)
    params["ln1b"] = jnp.zeros((n_layers, 1, hidden), jnp.float32)
    params["ln2g"] = jnp.ones((n_layers, 1, hidden), jnp.float32)
    params["ln2b"] = jnp.zeros((n_layers, 1, hidden), jnp.float32)
    params["lnfg"] = jnp.ones((1, hidden), jnp.float32)      # encoder_norm
    params["lnfb"] = jnp.zeros((1, hidden), jnp.float32)
    return params


if __name__ == "__main__":
    B, S, F = 2, 8, 10            # batch, sequence length, num input features
    H, NL, NH = 32, 2, 4          # hidden, n_layers, attn_heads

    key = jax.random.PRNGKey(0)
    kx, kd, kp = jax.random.split(key, 3)
    x = jax.random.normal(kx, (B, S, F), dtype=jnp.float32)
    doy = jax.random.randint(kd, (B, S), 1, 366)
    mask = jnp.ones((B, S), jnp.int32).at[0, -2:].set(0)   # pad last 2 of batch 0

    params = init_params(kp, F, H, NL, NH)
    # batch_tile=1 exercises the parallel row-tile grid axis (2 tiles x 2 layers).
    out = bert_forward(x, doy, mask, params, batch_tile=1)
    jax.block_until_ready(out)
    assert out.shape == (B, S, H) and out.dtype == jnp.float32
    print("KERNEL_OK")
</pallas_src>

<mosaic_0001>
module attributes {stable_mosaic.version = 11 : i64} {
  func.func @bert_fused_kernel(%arg0: i32, %arg1: i32, %arg2: memref<1x8x10xbf16, #tpu.memory_space<vmem>>, %arg3: memref<1x8x32xf32, #tpu.memory_space<vmem>>, %arg4: memref<1x1x8xf32, #tpu.memory_space<vmem>>, %arg5: memref<10x32xbf16, #tpu.memory_space<vmem>>, %arg6: memref<1x32xf32, #tpu.memory_space<vmem>>, %arg7: memref<1x32x96xbf16, #tpu.memory_space<vmem>>, %arg8: memref<1x1x96xf32, #tpu.memory_space<vmem>>, %arg9: memref<1x32x32xbf16, #tpu.memory_space<vmem>>, %arg10: memref<1x1x32xf32, #tpu.memory_space<vmem>>, %arg11: memref<1x32x128xbf16, #tpu.memory_space<vmem>>, %arg12: memref<1x1x128xf32, #tpu.memory_space<vmem>>, %arg13: memref<1x128x32xbf16, #tpu.memory_space<vmem>>, %arg14: memref<1x1x32xf32, #tpu.memory_space<vmem>>, %arg15: memref<1x1x32xf32, #tpu.memory_space<vmem>>, %arg16: memref<1x1x32xf32, #tpu.memory_space<vmem>>, %arg17: memref<1x1x32xf32, #tpu.memory_space<vmem>>, %arg18: memref<1x1x32xf32, #tpu.memory_space<vmem>>, %arg19: memref<1x32xf32, #tpu.memory_space<vmem>>, %arg20: memref<1x32xf32, #tpu.memory_space<vmem>>, %arg21: memref<1x8x32xf32, #tpu.memory_space<vmem>>) attributes {dimension_semantics = [#tpu.dimension_semantics<parallel>, #tpu.dimension_semantics<arbitrary>], iteration_bounds = array<i64: 2, 2>, scalar_prefetch = 0 : i64, scratch_operands = 0 : i64, tpu.core_type = #tpu.core_type<tc>, window_params = [{transform_indices = @transform_0, window_bounds = array<i64: 1, 8, 10>}, {transform_indices = @transform_1, window_bounds = array<i64: 1, 8, 32>}, {transform_indices = @transform_2, window_bounds = array<i64: 1, 1, 8>}, {pipeline_mode = #tpu.pipeline_mode<synchronous>, transform_indices = @transform_3, window_bounds = array<i64: 10, 32>}, {pipeline_mode = #tpu.pipeline_mode<synchronous>, transform_indices = @transform_4, window_bounds = array<i64: 1, 32>}, {transform_indices = @transform_5, window_bounds = array<i64: 1, 32, 96>}, {transform_indices = @transform_6, window_bounds = array<i64: 1, 1, 96>}, {transform_indices = @transform_7, window_bounds = array<i64: 1, 32, 32>}, {transform_indices = @transform_8, window_bounds = array<i64: 1, 1, 32>}, {transform_indices = @transform_9, window_bounds = array<i64: 1, 32, 128>}, {transform_indices = @transform_10, window_bounds = array<i64: 1, 1, 128>}, {transform_indices = @transform_11, window_bounds = array<i64: 1, 128, 32>}, {transform_indices = @transform_12, window_bounds = array<i64: 1, 1, 32>}, {transform_indices = @transform_13, window_bounds = array<i64: 1, 1, 32>}, {transform_indices = @transform_14, window_bounds = array<i64: 1, 1, 32>}, {transform_indices = @transform_15, window_bounds = array<i64: 1, 1, 32>}, {transform_indices = @transform_16, window_bounds = array<i64: 1, 1, 32>}, {pipeline_mode = #tpu.pipeline_mode<synchronous>, transform_indices = @transform_17, window_bounds = array<i64: 1, 32>}, {pipeline_mode = #tpu.pipeline_mode<synchronous>, transform_indices = @transform_18, window_bounds = array<i64: 1, 32>}, {transform_indices = @transform_19, window_bounds = array<i64: 1, 8, 32>}]} {
    %c0_i32 = arith.constant 0 : i32
    %0 = arith.cmpi eq, %arg1, %c0_i32 : i32
    %1 = arith.extui %0 : i1 to i32
    %c0_i32_0 = arith.constant 0 : i32
    %2 = arith.cmpi ne, %1, %c0_i32_0 : i32
    scf.if %2 {
      %c0_74 = arith.constant 0 : index
      %c0_75 = arith.constant 0 : index
      %c0_76 = arith.constant 0 : index
      %190 = vector.load %arg2[%c0_74, %c0_75, %c0_76] : memref<1x8x10xbf16, #tpu.memory_space<vmem>>, vector<1x8x10xbf16>
      %191 = vector.shape_cast %190 : vector<1x8x10xbf16> to vector<8x10xbf16>
      %c0_77 = arith.constant 0 : index
      %c0_78 = arith.constant 0 : index
      %192 = vector.load %arg5[%c0_77, %c0_78] : memref<10x32xbf16, #tpu.memory_space<vmem>>, vector<10x32xbf16>
      %cst_79 = arith.constant dense<0.000000e+00> : vector<8x32xf32>
      %193 = tpu.matmul %191, %192, %cst_79 {dimension_numbers = #tpu.dot_dimension_numbers<[1], [0], [0], [1], [0, 0, 1, 1], [], []>} : vector<8x10xbf16>, vector<10x32xbf16>, vector<8x32xf32> -> vector<8x32xf32>
      %c0_80 = arith.constant 0 : index
      %c0_81 = arith.constant 0 : index
      %194 = vector.load %arg6[%c0_80, %c0_81] : memref<1x32xf32, #tpu.memory_space<vmem>>, vector<1x32xf32>
      %195 = vector.broadcast %194 : vector<1x32xf32> to vector<8x32xf32>
      %196 = arith.addf %193, %195 : vector<8x32xf32>
      %c0_82 = arith.constant 0 : index
      %c0_83 = arith.constant 0 : index
      %c0_84 = arith.constant 0 : index
      %197 = vector.load %arg3[%c0_82, %c0_83, %c0_84] : memref<1x8x32xf32, #tpu.memory_space<vmem>>, vector<1x8x32xf32>
      %198 = vector.shape_cast %197 : vector<1x8x32xf32> to vector<8x32xf32>
      %199 = arith.addf %196, %198 : vector<8x32xf32>
      %200 = vector.shape_cast %199 : vector<8x32xf32> to vector<1x8x32xf32>
      %c0_85 = arith.constant 0 : index
      %c0_86 = arith.constant 0 : index
      %c0_87 = arith.constant 0 : index
      %201 = vector.load %arg21[%c0_85, %c0_86, %c0_87] : memref<1x8x32xf32, #tpu.memory_space<vmem>>, vector<1x8x32xf32>
      tpu.vector_store %arg21[%c0_85, %c0_86, %c0_87], %200 {strides = array<i32>} : memref<1x8x32xf32, #tpu.memory_space<vmem>>, vector<1x8x32xf32>,
    } else {
    }
    %c0 = arith.constant 0 : index
    %c0_1 = arith.constant 0 : index
    %c0_2 = arith.constant 0 : index
    %3 = vector.load %arg21[%c0, %c0_1, %c0_2] : memref<1x8x32xf32, #tpu.memory_space<vmem>>, vector<1x8x32xf32>
    %4 = vector.shape_cast %3 : vector<1x8x32xf32> to vector<8x32xf32>
    %5 = arith.truncf %4 : vector<8x32xf32> to vector<8x32xbf16>
    %c0_3 = arith.constant 0 : index
    %c0_4 = arith.constant 0 : index
    %c0_5 = arith.constant 0 : index
    %6 = vector.load %arg7[%c0_3, %c0_4, %c0_5] : memref<1x32x96xbf16, #tpu.memory_space<vmem>>, vector<1x32x96xbf16>
    %7 = vector.shape_cast %6 : vector<1x32x96xbf16> to vector<32x96xbf16>
    %cst = arith.constant dense<0.000000e+00> : vector<8x96xf32>
    %8 = tpu.matmul %5, %7, %cst {dimension_numbers = #tpu.dot_dimension_numbers<[1], [0], [0], [1], [0, 0, 1, 1], [], []>} : vector<8x32xbf16>, vector<32x96xbf16>, vector<8x96xf32> -> vector<8x96xf32>
    %c0_6 = arith.constant 0 : index
    %c0_7 = arith.constant 0 : index
    %c0_8 = arith.constant 0 : index
    %9 = vector.load %arg8[%c0_6, %c0_7, %c0_8] : memref<1x1x96xf32, #tpu.memory_space<vmem>>, vector<1x1x96xf32>
    %10 = vector.shape_cast %9 : vector<1x1x96xf32> to vector<1x96xf32>
    %11 = vector.broadcast %10 : vector<1x96xf32> to vector<8x96xf32>
    %12 = arith.addf %8, %11 : vector<8x96xf32>
    %13 = arith.truncf %12 : vector<8x96xf32> to vector<8x96xbf16>
    %c0_9 = arith.constant 0 : index
    %c0_10 = arith.constant 0 : index
    %c0_11 = arith.constant 0 : index
    %14 = vector.load %arg4[%c0_9, %c0_10, %c0_11] : memref<1x1x8xf32, #tpu.memory_space<vmem>>, vector<1x1x8xf32>
    %15 = vector.extract_strided_slice %13 {offsets = [0, 0], sizes = [8, 8], strides = [1, 1]} : vector<8x96xbf16> to vector<8x8xbf16>
    %16 = vector.shape_cast %15 : vector<8x8xbf16> to vector<1x8x8xbf16>
    %17 = vector.extract_strided_slice %13 {offsets = [0, 32], sizes = [8, 8], strides = [1, 1]} : vector<8x96xbf16> to vector<8x8xbf16>
    %18 = vector.shape_cast %17 : vector<8x8xbf16> to vector<1x8x8xbf16>
    %19 = vector.extract_strided_slice %13 {offsets = [0, 64], sizes = [8, 8], strides = [1, 1]} : vector<8x96xbf16> to vector<8x8xbf16>
    %20 = vector.shape_cast %19 : vector<8x8xbf16> to vector<1x8x8xbf16>
    %cst_12 = arith.constant dense<0.000000e+00> : vector<1x8x8xf32>
    %21 = tpu.matmul %16, %18, %cst_12 {dimension_numbers = #tpu.dot_dimension_numbers<[2], [2], [1], [1], [0, 0, 0, 1, 1, 1], [0], [0]>} : vector<1x8x8xbf16>, vector<1x8x8xbf16>, vector<1x8x8xf32> -> vector<1x8x8xf32>
    %22 = vector.broadcast %14 : vector<1x1x8xf32> to vector<1x8x8xf32>
    %23 = arith.addf %21, %22 : vector<1x8x8xf32>
    %cst_13 = arith.constant dense<0xFF800000> : vector<1x8xf32>
    %24 = vector.multi_reduction <maximumf>, %23, %cst_13 [2] : vector<1x8x8xf32> to vector<1x8xf32>
    %25 = vector.shape_cast %24 : vector<1x8xf32> to vector<1x8x1xf32>
    %26 = vector.broadcast %25 : vector<1x8x1xf32> to vector<1x8x8xf32>
    %27 = arith.subf %23, %26 : vector<1x8x8xf32>
    %28 = math.exp %27 : vector<1x8x8xf32>
    %cst_14 = arith.constant dense<0.000000e+00> : vector<1x8xf32>
    %29 = vector.multi_reduction <add>, %28, %cst_14 [2] : vector<1x8x8xf32> to vector<1x8xf32>
    %30 = vector.shape_cast %29 : vector<1x8xf32> to vector<1x8x1xf32>
    %31 = tpu.reciprocal %30 {approx = true} : vector<1x8x1xf32> -> vector<1x8x1xf32>
    %32 = vector.broadcast %31 : vector<1x8x1xf32> to vector<1x8x8xf32>
    %33 = arith.mulf %28, %32 : vector<1x8x8xf32>
    %34 = arith.truncf %33 : vector<1x8x8xf32> to vector<1x8x8xbf16>
    %cst_15 = arith.constant dense<0.000000e+00> : vector<1x8x8xf32>
    %35 = tpu.matmul %34, %20, %cst_15 {dimension_numbers = #tpu.dot_dimension_numbers<[2], [1], [1], [2], [0, 0, 0, 1, 1, 2], [0], [0]>} : vector<1x8x8xbf16>, vector<1x8x8xbf16>, vector<1x8x8xf32> -> vector<1x8x8xf32>
    %36 = vector.shape_cast %35 : vector<1x8x8xf32> to vector<8x8xf32>
    %37 = vector.extract_strided_slice %13 {offsets = [0, 8], sizes = [8, 8], strides = [1, 1]} : vector<8x96xbf16> to vector<8x8xbf16>
    %38 = vector.shape_cast %37 : vector<8x8xbf16> to vector<1x8x8xbf16>
    %39 = vector.extract_strided_slice %13 {offsets = [0, 40], sizes = [8, 8], strides = [1, 1]} : vector<8x96xbf16> to vector<8x8xbf16>
    %40 = vector.shape_cast %39 : vector<8x8xbf16> to vector<1x8x8xbf16>
    %41 = vector.extract_strided_slice %13 {offsets = [0, 72], sizes = [8, 8], strides = [1, 1]} : vector<8x96xbf16> to vector<8x8xbf16>
    %42 = vector.shape_cast %41 : vector<8x8xbf16> to vector<1x8x8xbf16>
    %cst_16 = arith.constant dense<0.000000e+00> : vector<1x8x8xf32>
    %43 = tpu.matmul %38, %40, %cst_16 {dimension_numbers = #tpu.dot_dimension_numbers<[2], [2], [1], [1], [0, 0, 0, 1, 1, 1], [0], [0]>} : vector<1x8x8xbf16>, vector<1x8x8xbf16>, vector<1x8x8xf32> -> vector<1x8x8xf32>
    %44 = vector.broadcast %14 : vector<1x1x8xf32> to vector<1x8x8xf32>
    %45 = arith.addf %43, %44 : vector<1x8x8xf32>
    %cst_17 = arith.constant dense<0xFF800000> : vector<1x8xf32>
    %46 = vector.multi_reduction <maximumf>, %45, %cst_17 [2] : vector<1x8x8xf32> to vector<1x8xf32>
    %47 = vector.shape_cast %46 : vector<1x8xf32> to vector<1x8x1xf32>
    %48 = vector.broadcast %47 : vector<1x8x1xf32> to vector<1x8x8xf32>
    %49 = arith.subf %45, %48 : vector<1x8x8xf32>
    %50 = math.exp %49 : vector<1x8x8xf32>
    %cst_18 = arith.constant dense<0.000000e+00> : vector<1x8xf32>
    %51 = vector.multi_reduction <add>, %50, %cst_18 [2] : vector<1x8x8xf32> to vector<1x8xf32>
    %52 = vector.shape_cast %51 : vector<1x8xf32> to vector<1x8x1xf32>
    %53 = tpu.reciprocal %52 {approx = true} : vector<1x8x1xf32> -> vector<1x8x1xf32>
    %54 = vector.broadcast %53 : vector<1x8x1xf32> to vector<1x8x8xf32>
    %55 = arith.mulf %50, %54 : vector<1x8x8xf32>
    %56 = arith.truncf %55 : vector<1x8x8xf32> to vector<1x8x8xbf16>
    %cst_19 = arith.constant dense<0.000000e+00> : vector<1x8x8xf32>
    %57 = tpu.matmul %56, %42, %cst_19 {dimension_numbers = #tpu.dot_dimension_numbers<[2], [1], [1], [2], [0, 0, 0, 1, 1, 2], [0], [0]>} : vector<1x8x8xbf16>, vector<1x8x8xbf16>, vector<1x8x8xf32> -> vector<1x8x8xf32>
    %58 = vector.shape_cast %57 : vector<1x8x8xf32> to vector<8x8xf32>
    %59 = vector.extract_strided_slice %13 {offsets = [0, 16], sizes = [8, 8], strides = [1, 1]} : vector<8x96xbf16> to vector<8x8xbf16>
    %60 = vector.shape_cast %59 : vector<8x8xbf16> to vector<1x8x8xbf16>
    %61 = vector.extract_strided_slice %13 {offsets = [0, 48], sizes = [8, 8], strides = [1, 1]} : vector<8x96xbf16> to vector<8x8xbf16>
    %62 = vector.shape_cast %61 : vector<8x8xbf16> to vector<1x8x8xbf16>
    %63 = vector.extract_strided_slice %13 {offsets = [0, 80], sizes = [8, 8], strides = [1, 1]} : vector<8x96xbf16> to vector<8x8xbf16>
    %64 = vector.shape_cast %63 : vector<8x8xbf16> to vector<1x8x8xbf16>
    %cst_20 = arith.constant dense<0.000000e+00> : vector<1x8x8xf32>
    %65 = tpu.matmul %60, %62, %cst_20 {dimension_numbers = #tpu.dot_dimension_numbers<[2], [2], [1], [1], [0, 0, 0, 1, 1, 1], [0], [0]>} : vector<1x8x8xbf16>, vector<1x8x8xbf16>, vector<1x8x8xf32> -> vector<1x8x8xf32>
    %66 = vector.broadcast %14 : vector<1x1x8xf32> to vector<1x8x8xf32>
    %67 = arith.addf %65, %66 : vector<1x8x8xf32>
    %cst_21 = arith.constant dense<0xFF800000> : vector<1x8xf32>
    %68 = vector.multi_reduction <maximumf>, %67, %cst_21 [2] : vector<1x8x8xf32> to vector<1x8xf32>
    %69 = vector.shape_cast %68 : vector<1x8xf32> to vector<1x8x1xf32>
    %70 = vector.broadcast %69 : vector<1x8x1xf32> to vector<1x8x8xf32>
    %71 = arith.subf %67, %70 : vector<1x8x8xf32>
    %72 = math.exp %71 : vector<1x8x8xf32>
    %cst_22 = arith.constant dense<0.000000e+00> : vector<1x8xf32>
    %73 = vector.multi_reduction <add>, %72, %cst_22 [2] : vector<1x8x8xf32> to vector<1x8xf32>
    %74 = vector.shape_cast %73 : vector<1x8xf32> to vector<1x8x1xf32>
    %75 = tpu.reciprocal %74 {approx = true} : vector<1x8x1xf32> -> vector<1x8x1xf32>
    %76 = vector.broadcast %75 : vector<1x8x1xf32> to vector<1x8x8xf32>
    %77 = arith.mulf %72, %76 : vector<1x8x8xf32>
    %78 = arith.truncf %77 : vector<1x8x8xf32> to vector<1x8x8xbf16>
    %cst_23 = arith.constant dense<0.000000e+00> : vector<1x8x8xf32>
    %79 = tpu.matmul %78, %64, %cst_23 {dimension_numbers = #tpu.dot_dimension_numbers<[2], [1], [1], [2], [0, 0, 0, 1, 1, 2], [0], [0]>} : vector<1x8x8xbf16>, vector<1x8x8xbf16>, vector<1x8x8xf32> -> vector<1x8x8xf32>
    %80 = vector.shape_cast %79 : vector<1x8x8xf32> to vector<8x8xf32>
    %81 = vector.extract_strided_slice %13 {offsets = [0, 24], sizes = [8, 8], strides = [1, 1]} : vector<8x96xbf16> to vector<8x8xbf16>
    %82 = vector.shape_cast %81 : vector<8x8xbf16> to vector<1x8x8xbf16>
    %83 = vector.extract_strided_slice %13 {offsets = [0, 56], sizes = [8, 8], strides = [1, 1]} : vector<8x96xbf16> to vector<8x8xbf16>
    %84 = vector.shape_cast %83 : vector<8x8xbf16> to vector<1x8x8xbf16>
    %85 = vector.extract_strided_slice %13 {offsets = [0, 88], sizes = [8, 8], strides = [1, 1]} : vector<8x96xbf16> to vector<8x8xbf16>
    %86 = vector.shape_cast %85 : vector<8x8xbf16> to vector<1x8x8xbf16>
    %cst_24 = arith.constant dense<0.000000e+00> : vector<1x8x8xf32>
    %87 = tpu.matmul %82, %84, %cst_24 {dimension_numbers = #tpu.dot_dimension_numbers<[2], [2], [1], [1], [0, 0, 0, 1, 1, 1], [0], [0]>} : vector<1x8x8xbf16>, vector<1x8x8xbf16>, vector<1x8x8xf32> -> vector<1x8x8xf32>
    %88 = vector.broadcast %14 : vector<1x1x8xf32> to vector<1x8x8xf32>
    %89 = arith.addf %87, %88 : vector<1x8x8xf32>
    %cst_25 = arith.constant dense<0xFF800000> : vector<1x8xf32>
    %90 = vector.multi_reduction <maximumf>, %89, %cst_25 [2] : vector<1x8x8xf32> to vector<1x8xf32>
    %91 = vector.shape_cast %90 : vector<1x8xf32> to vector<1x8x1xf32>
    %92 = vector.broadcast %91 : vector<1x8x1xf32> to vector<1x8x8xf32>
    %93 = arith.subf %89, %92 : vector<1x8x8xf32>
    %94 = math.exp %93 : vector<1x8x8xf32>
    %cst_26 = arith.constant dense<0.000000e+00> : vector<1x8xf32>
    %95 = vector.multi_reduction <add>, %94, %cst_26 [2] : vector<1x8x8xf32> to vector<1x8xf32>
    %96 = vector.shape_cast %95 : vector<1x8xf32> to vector<1x8x1xf32>
    %97 = tpu.reciprocal %96 {approx = true} : vector<1x8x1xf32> -> vector<1x8x1xf32>
    %98 = vector.broadcast %97 : vector<1x8x1xf32> to vector<1x8x8xf32>
    %99 = arith.mulf %94, %98 : vector<1x8x8xf32>
    %100 = arith.truncf %99 : vector<1x8x8xf32> to vector<1x8x8xbf16>
    %cst_27 = arith.constant dense<0.000000e+00> : vector<1x8x8xf32>
    %101 = tpu.matmul %100, %86, %cst_27 {dimension_numbers = #tpu.dot_dimension_numbers<[2], [1], [1], [2], [0, 0, 0, 1, 1, 2], [0], [0]>} : vector<1x8x8xbf16>, vector<1x8x8xbf16>, vector<1x8x8xf32> -> vector<1x8x8xf32>
    %102 = vector.shape_cast %101 : vector<1x8x8xf32> to vector<8x8xf32>
    %103 = tpu.concatenate %36, %58, %80, %102 in 1 : vector<8x8xf32>, vector<8x8xf32>, vector<8x8xf32>, vector<8x8xf32> -> vector<8x32xf32>
    %104 = arith.truncf %103 : vector<8x32xf32> to vector<8x32xbf16>
    %c0_28 = arith.constant 0 : index
    %c0_29 = arith.constant 0 : index
    %c0_30 = arith.constant 0 : index
    %105 = vector.load %arg9[%c0_28, %c0_29, %c0_30] : memref<1x32x32xbf16, #tpu.memory_space<vmem>>, vector<1x32x32xbf16>
    %106 = vector.shape_cast %105 : vector<1x32x32xbf16> to vector<32x32xbf16>
    %cst_31 = arith.constant dense<0.000000e+00> : vector<8x32xf32>
    %107 = tpu.matmul %104, %106, %cst_31 {dimension_numbers = #tpu.dot_dimension_numbers<[1], [0], [0], [1], [0, 0, 1, 1], [], []>} : vector<8x32xbf16>, vector<32x32xbf16>, vector<8x32xf32> -> vector<8x32xf32>
    %c0_32 = arith.constant 0 : index
    %c0_33 = arith.constant 0 : index
    %c0_34 = arith.constant 0 : index
    %108 = vector.load %arg10[%c0_32, %c0_33, %c0_34] : memref<1x1x32xf32, #tpu.memory_space<vmem>>, vector<1x1x32xf32>
    %109 = vector.shape_cast %108 : vector<1x1x32xf32> to vector<1x32xf32>
    %110 = vector.broadcast %109 : vector<1x32xf32> to vector<8x32xf32>
    %111 = arith.addf %107, %110 : vector<8x32xf32>
    %112 = arith.addf %4, %111 : vector<8x32xf32>
    %c0_35 = arith.constant 0 : index
    %c0_36 = arith.constant 0 : index
    %c0_37 = arith.constant 0 : index
    %113 = vector.load %arg15[%c0_35, %c0_36, %c0_37] : memref<1x1x32xf32, #tpu.memory_space<vmem>>, vector<1x1x32xf32>
    %114 = vector.shape_cast %113 : vector<1x1x32xf32> to vector<1x32xf32>
    %c0_38 = arith.constant 0 : index
    %c0_39 = arith.constant 0 : index
    %c0_40 = arith.constant 0 : index
    %115 = vector.load %arg16[%c0_38, %c0_39, %c0_40] : memref<1x1x32xf32, #tpu.memory_space<vmem>>, vector<1x1x32xf32>
    %116 = vector.shape_cast %115 : vector<1x1x32xf32> to vector<1x32xf32>
    %cst_41 = arith.constant dense<0.000000e+00> : vector<8xf32>
    %117 = vector.multi_reduction <add>, %112, %cst_41 [1] : vector<8x32xf32> to vector<8xf32>
    %118 = vector.shape_cast %117 : vector<8xf32> to vector<8x1xf32>
    %cst_42 = arith.constant 3.200000e+01 : f32
    %119 = vector.broadcast %cst_42 : f32 to vector<8x1xf32>
    %120 = arith.divf %118, %119 : vector<8x1xf32>
    %121 = vector.broadcast %120 : vector<8x1xf32> to vector<8x32xf32>
    %122 = arith.subf %112, %121 : vector<8x32xf32>
    %123 = arith.mulf %122, %122 : vector<8x32xf32>
    %cst_43 = arith.constant dense<0.000000e+00> : vector<8xf32>
    %124 = vector.multi_reduction <add>, %123, %cst_43 [1] : vector<8x32xf32> to vector<8xf32>
    %125 = vector.shape_cast %124 : vector<8xf32> to vector<8x1xf32>
    %cst_44 = arith.constant 3.200000e+01 : f32
    %126 = vector.broadcast %cst_44 : f32 to vector<8x1xf32>
    %127 = arith.divf %125, %126 : vector<8x1xf32>
    %128 = vector.broadcast %120 : vector<8x1xf32> to vector<8x32xf32>
    %129 = arith.subf %112, %128 : vector<8x32xf32>
    %cst_45 = arith.constant 9.99999974E-6 : f32
    %130 = vector.broadcast %cst_45 : f32 to vector<8x1xf32>
    %131 = arith.addf %127, %130 : vector<8x1xf32>
    %132 = math.rsqrt %131 : vector<8x1xf32>
    %133 = vector.broadcast %132 : vector<8x1xf32> to vector<8x32xf32>
    %134 = arith.mulf %129, %133 : vector<8x32xf32>
    %135 = vector.broadcast %114 : vector<1x32xf32> to vector<8x32xf32>
    %136 = arith.mulf %134, %135 : vector<8x32xf32>
    %137 = vector.broadcast %116 : vector<1x32xf32> to vector<8x32xf32>
    %138 = arith.addf %136, %137 : vector<8x32xf32>
    %139 = arith.truncf %138 : vector<8x32xf32> to vector<8x32xbf16>
    %c0_46 = arith.constant 0 : index
    %c0_47 = arith.constant 0 : index
    %c0_48 = arith.constant 0 : index
    %140 = vector.load %arg11[%c0_46, %c0_47, %c0_48] : memref<1x32x128xbf16, #tpu.memory_space<vmem>>, vector<1x32x128xbf16>
    %141 = vector.shape_cast %140 : vector<1x32x128xbf16> to vector<32x128xbf16>
    %cst_49 = arith.constant dense<0.000000e+00> : vector<8x128xf32>
    %142 = tpu.matmul %139, %141, %cst_49 {dimension_numbers = #tpu.dot_dimension_numbers<[1], [0], [0], [1], [0, 0, 1, 1], [], []>} : vector<8x32xbf16>, vector<32x128xbf16>, vector<8x128xf32> -> vector<8x128xf32>
    %c0_50 = arith.constant 0 : index
    %c0_51 = arith.constant 0 : index
    %c0_52 = arith.constant 0 : index
    %143 = vector.load %arg12[%c0_50, %c0_51, %c0_52] : memref<1x1x128xf32, #tpu.memory_space<vmem>>, vector<1x1x128xf32>
    %144 = vector.shape_cast %143 : vector<1x1x128xf32> to vector<1x128xf32>
    %145 = vector.broadcast %144 : vector<1x128xf32> to vector<8x128xf32>
    %146 = arith.addf %142, %145 : vector<8x128xf32>
    %cst_53 = arith.constant 0.000000e+00 : f32
    %147 = vector.broadcast %cst_53 : f32 to vector<8x128xf32>
    %148 = arith.maximumf %146, %147 : vector<8x128xf32>
    %149 = arith.truncf %148 : vector<8x128xf32> to vector<8x128xbf16>
    %c0_54 = arith.constant 0 : index
    %c0_55 = arith.constant 0 : index
    %c0_56 = arith.constant 0 : index
    %150 = vector.load %arg13[%c0_54, %c0_55, %c0_56] : memref<1x128x32xbf16, #tpu.memory_space<vmem>>, vector<1x128x32xbf16>
    %151 = vector.shape_cast %150 : vector<1x128x32xbf16> to vector<128x32xbf16>
    %cst_57 = arith.constant dense<0.000000e+00> : vector<8x32xf32>
    %152 = tpu.matmul %149, %151, %cst_57 {dimension_numbers = #tpu.dot_dimension_numbers<[1], [0], [0], [1], [0, 0, 1, 1], [], []>} : vector<8x128xbf16>, vector<128x32xbf16>, vector<8x32xf32> -> vector<8x32xf32>
    %c0_58 = arith.constant 0 : index
    %c0_59 = arith.constant 0 : index
    %c0_60 = arith.constant 0 : index
    %153 = vector.load %arg14[%c0_58, %c0_59, %c0_60] : memref<1x1x32xf32, #tpu.memory_space<vmem>>, vector<1x1x32xf32>
    %154 = vector.shape_cast %153 : vector<1x1x32xf32> to vector<1x32xf32>
    %155 = vector.broadcast %154 : vector<1x32xf32> to vector<8x32xf32>
    %156 = arith.addf %152, %155 : vector<8x32xf32>
    %157 = arith.addf %138, %156 : vector<8x32xf32>
    %c0_61 = arith.constant 0 : index
    %c0_62 = arith.constant 0 : index
    %c0_63 = arith.constant 0 : index
    %158 = vector.load %arg17[%c0_61, %c0_62, %c0_63] : memref<1x1x32xf32, #tpu.memory_space<vmem>>, vector<1x1x32xf32>
    %159 = vector.shape_cast %158 : vector<1x1x32xf32> to vector<1x32xf32>
    %c0_64 = arith.constant 0 : index
    %c0_65 = arith.constant 0 : index
    %c0_66 = arith.constant 0 : index
    %160 = vector.load %arg18[%c0_64, %c0_65, %c0_66] : memref<1x1x32xf32, #tpu.memory_space<vmem>>, vector<1x1x32xf32>
    %161 = vector.shape_cast %160 : vector<1x1x32xf32> to vector<1x32xf32>
    %cst_67 = arith.constant dense<0.000000e+00> : vector<8xf32>
    %162 = vector.multi_reduction <add>, %157, %cst_67 [1] : vector<8x32xf32> to vector<8xf32>
    %163 = vector.shape_cast %162 : vector<8xf32> to vector<8x1xf32>
    %cst_68 = arith.constant 3.200000e+01 : f32
    %164 = vector.broadcast %cst_68 : f32 to vector<8x1xf32>
    %165 = arith.divf %163, %164 : vector<8x1xf32>
    %166 = vector.broadcast %165 : vector<8x1xf32> to vector<8x32xf32>
    %167 = arith.subf %157, %166 : vector<8x32xf32>
    %168 = arith.mulf %167, %167 : vector<8x32xf32>
    %cst_69 = arith.constant dense<0.000000e+00> : vector<8xf32>
    %169 = vector.multi_reduction <add>, %168, %cst_69 [1] : vector<8x32xf32> to vector<8xf32>
    %170 = vector.shape_cast %169 : vector<8xf32> to vector<8x1xf32>
    %cst_70 = arith.constant 3.200000e+01 : f32
    %171 = vector.broadcast %cst_70 : f32 to vector<8x1xf32>
    %172 = arith.divf %170, %171 : vector<8x1xf32>
    %173 = vector.broadcast %165 : vector<8x1xf32> to vector<8x32xf32>
    %174 = arith.subf %157, %173 : vector<8x32xf32>
    %cst_71 = arith.constant 9.99999974E-6 : f32
    %175 = vector.broadcast %cst_71 : f32 to vector<8x1xf32>
    %176 = arith.addf %172, %175 : vector<8x1xf32>
    %177 = math.rsqrt %176 : vector<8x1xf32>
    %178 = vector.broadcast %177 : vector<8x1xf32> to vector<8x32xf32>
    %179 = arith.mulf %174, %178 : vector<8x32xf32>
    %180 = vector.broadcast %159 : vector<1x32xf32> to vector<8x32xf32>
    %181 = arith.mulf %179, %180 : vector<8x32xf32>
    %182 = vector.broadcast %161 : vector<1x32xf32> to vector<8x32xf32>
    %183 = arith.addf %181, %182 : vector<8x32xf32>
    %c1_i32 = arith.constant 1 : i32
    %184 = arith.cmpi eq, %arg1, %c1_i32 : i32
    %true = arith.constant true
    %185 = arith.xori %184, %true : i1
    %186 = arith.extui %185 : i1 to i32
    %c0_i32_72 = arith.constant 0 : i32
    %187 = arith.cmpi ne, %186, %c0_i32_72 : i32
    scf.if %187 {
      %190 = vector.shape_cast %183 : vector<8x32xf32> to vector<1x8x32xf32>
      %c0_74 = arith.constant 0 : index
      %c0_75 = arith.constant 0 : index
      %c0_76 = arith.constant 0 : index
      %191 = vector.load %arg21[%c0_74, %c0_75, %c0_76] : memref<1x8x32xf32, #tpu.memory_space<vmem>>, vector<1x8x32xf32>
      tpu.vector_store %arg21[%c0_74, %c0_75, %c0_76], %190 {strides = array<i32>} : memref<1x8x32xf32, #tpu.memory_space<vmem>>, vector<1x8x32xf32>,
    } else {
    }
    %188 = arith.extui %184 : i1 to i32
    %c0_i32_73 = arith.constant 0 : i32
    %189 = arith.cmpi ne, %188, %c0_i32_73 : i32
    scf.if %189 {
      %c0_74 = arith.constant 0 : index
      %c0_75 = arith.constant 0 : index
      %190 = vector.load %arg19[%c0_74, %c0_75] : memref<1x32xf32, #tpu.memory_space<vmem>>, vector<1x32xf32>
      %c0_76 = arith.constant 0 : index
      %c0_77 = arith.constant 0 : index
      %191 = vector.load %arg20[%c0_76, %c0_77] : memref<1x32xf32, #tpu.memory_space<vmem>>, vector<1x32xf32>
      %cst_78 = arith.constant dense<0.000000e+00> : vector<8xf32>
      %192 = vector.multi_reduction <add>, %183, %cst_78 [1] : vector<8x32xf32> to vector<8xf32>
      %193 = vector.shape_cast %192 : vector<8xf32> to vector<8x1xf32>
      %cst_79 = arith.constant 3.200000e+01 : f32
      %194 = vector.broadcast %cst_79 : f32 to vector<8x1xf32>
      %195 = arith.divf %193, %194 : vector<8x1xf32>
      %196 = vector.broadcast %195 : vector<8x1xf32> to vector<8x32xf32>
      %197 = arith.subf %183, %196 : vector<8x32xf32>
      %198 = arith.mulf %197, %197 : vector<8x32xf32>
      %cst_80 = arith.constant dense<0.000000e+00> : vector<8xf32>
      %199 = vector.multi_reduction <add>, %198, %cst_80 [1] : vector<8x32xf32> to vector<8xf32>
      %200 = vector.shape_cast %199 : vector<8xf32> to vector<8x1xf32>
      %cst_81 = arith.constant 3.200000e+01 : f32
      %201 = vector.broadcast %cst_81 : f32 to vector<8x1xf32>
      %202 = arith.divf %200, %201 : vector<8x1xf32>
      %203 = vector.broadcast %195 : vector<8x1xf32> to vector<8x32xf32>
      %204 = arith.subf %183, %203 : vector<8x32xf32>
      %cst_82 = arith.constant 9.99999974E-6 : f32
      %205 = vector.broadcast %cst_82 : f32 to vector<8x1xf32>
      %206 = arith.addf %202, %205 : vector<8x1xf32>
      %207 = math.rsqrt %206 : vector<8x1xf32>
      %208 = vector.broadcast %207 : vector<8x1xf32> to vector<8x32xf32>
      %209 = arith.mulf %204, %208 : vector<8x32xf32>
      %210 = vector.broadcast %190 : vector<1x32xf32> to vector<8x32xf32>
      %211 = arith.mulf %209, %210 : vector<8x32xf32>
      %212 = vector.broadcast %191 : vector<1x32xf32> to vector<8x32xf32>
      %213 = arith.addf %211, %212 : vector<8x32xf32>
      %214 = vector.shape_cast %213 : vector<8x32xf32> to vector<1x8x32xf32>
      %c0_83 = arith.constant 0 : index
      %c0_84 = arith.constant 0 : index
      %c0_85 = arith.constant 0 : index
      %215 = vector.load %arg21[%c0_83, %c0_84, %c0_85] : memref<1x8x32xf32, #tpu.memory_space<vmem>>, vector<1x8x32xf32>
      tpu.vector_store %arg21[%c0_83, %c0_84, %c0_85], %214 {strides = array<i32>} : memref<1x8x32xf32, #tpu.memory_space<vmem>>, vector<1x8x32xf32>,
    } else {
    }
    return
  }
  func.func @transform_0(%arg0: i32, %arg1: i32) -> (i32, i32, i32) {
    %c0_i32 = arith.constant 0 : i32
    %c0_i32_0 = arith.constant 0 : i32
    %c0_i32_1 = arith.constant 0 : i32
    return %arg0, %c0_i32, %c0_i32_0 : i32, i32, i32
  }
  func.func @transform_1(%arg0: i32, %arg1: i32) -> (i32, i32, i32) {
    %c0_i32 = arith.constant 0 : i32
    %c0_i32_0 = arith.constant 0 : i32
    %c0_i32_1 = arith.constant 0 : i32
    return %arg0, %c0_i32, %c0_i32_0 : i32, i32, i32
  }
  func.func @transform_2(%arg0: i32, %arg1: i32) -> (i32, i32, i32) {
    %c0_i32 = arith.constant 0 : i32
    %c0_i32_0 = arith.constant 0 : i32
    %c0_i32_1 = arith.constant 0 : i32
    return %arg0, %c0_i32, %c0_i32_0 : i32, i32, i32
  }
  func.func @transform_3(%arg0: i32, %arg1: i32) -> (i32, i32) {
    %c0_i32 = arith.constant 0 : i32
    %c0_i32_0 = arith.constant 0 : i32
    %c0_i32_1 = arith.constant 0 : i32
    return %c0_i32, %c0_i32_0 : i32, i32
  }
  func.func @transform_4(%arg0: i32, %arg1: i32) -> (i32, i32) {
    %c0_i32 = arith.constant 0 : i32
    %c0_i32_0 = arith.constant 0 : i32
    %c0_i32_1 = arith.constant 0 : i32
    return %c0_i32, %c0_i32_0 : i32, i32
  }
  func.func @transform_5(%arg0: i32, %arg1: i32) -> (i32, i32, i32) {
    %c0_i32 = arith.constant 0 : i32
    %c0_i32_0 = arith.constant 0 : i32
    %c0_i32_1 = arith.constant 0 : i32
    return %arg1, %c0_i32, %c0_i32_0 : i32, i32, i32
  }
  func.func @transform_6(%arg0: i32, %arg1: i32) -> (i32, i32, i32) {
    %c0_i32 = arith.constant 0 : i32
    %c0_i32_0 = arith.constant 0 : i32
    %c0_i32_1 = arith.constant 0 : i32
    return %arg1, %c0_i32, %c0_i32_0 : i32, i32, i32
  }
  func.func @transform_7(%arg0: i32, %arg1: i32) -> (i32, i32, i32) {
    %c0_i32 = arith.constant 0 : i32
    %c0_i32_0 = arith.constant 0 : i32
    %c0_i32_1 = arith.constant 0 : i32
    return %arg1, %c0_i32, %c0_i32_0 : i32, i32, i32
  }
  func.func @transform_8(%arg0: i32, %arg1: i32) -> (i32, i32, i32) {
    %c0_i32 = arith.constant 0 : i32
    %c0_i32_0 = arith.constant 0 : i32
    %c0_i32_1 = arith.constant 0 : i32
    return %arg1, %c0_i32, %c0_i32_0 : i32, i32, i32
  }
  func.func @transform_9(%arg0: i32, %arg1: i32) -> (i32, i32, i32) {
    %c0_i32 = arith.constant 0 : i32
    %c0_i32_0 = arith.constant 0 : i32
    %c0_i32_1 = arith.constant 0 : i32
    return %arg1, %c0_i32, %c0_i32_0 : i32, i32, i32
  }
  func.func @transform_10(%arg0: i32, %arg1: i32) -> (i32, i32, i32) {
    %c0_i32 = arith.constant 0 : i32
    %c0_i32_0 = arith.constant 0 : i32
    %c0_i32_1 = arith.constant 0 : i32
    return %arg1, %c0_i32, %c0_i32_0 : i32, i32, i32
  }
  func.func @transform_11(%arg0: i32, %arg1: i32) -> (i32, i32, i32) {
    %c0_i32 = arith.constant 0 : i32
    %c0_i32_0 = arith.constant 0 : i32
    %c0_i32_1 = arith.constant 0 : i32
    return %arg1, %c0_i32, %c0_i32_0 : i32, i32, i32
  }
  func.func @transform_12(%arg0: i32, %arg1: i32) -> (i32, i32, i32) {
    %c0_i32 = arith.constant 0 : i32
    %c0_i32_0 = arith.constant 0 : i32
    %c0_i32_1 = arith.constant 0 : i32
    return %arg1, %c0_i32, %c0_i32_0 : i32, i32, i32
  }
  func.func @transform_13(%arg0: i32, %arg1: i32) -> (i32, i32, i32) {
    %c0_i32 = arith.constant 0 : i32
    %c0_i32_0 = arith.constant 0 : i32
    %c0_i32_1 = arith.constant 0 : i32
    return %arg1, %c0_i32, %c0_i32_0 : i32, i32, i32
  }
  func.func @transform_14(%arg0: i32, %arg1: i32) -> (i32, i32, i32) {
    %c0_i32 = arith.constant 0 : i32
    %c0_i32_0 = arith.constant 0 : i32
    %c0_i32_1 = arith.constant 0 : i32
    return %arg1, %c0_i32, %c0_i32_0 : i32, i32, i32
  }
  func.func @transform_15(%arg0: i32, %arg1: i32) -> (i32, i32, i32) {
    %c0_i32 = arith.constant 0 : i32
    %c0_i32_0 = arith.constant 0 : i32
    %c0_i32_1 = arith.constant 0 : i32
    return %arg1, %c0_i32, %c0_i32_0 : i32, i32, i32
  }
  func.func @transform_16(%arg0: i32, %arg1: i32) -> (i32, i32, i32) {
    %c0_i32 = arith.constant 0 : i32
    %c0_i32_0 = arith.constant 0 : i32
    %c0_i32_1 = arith.constant 0 : i32
    return %arg1, %c0_i32, %c0_i32_0 : i32, i32, i32
  }
  func.func @transform_17(%arg0: i32, %arg1: i32) -> (i32, i32) {
    %c0_i32 = arith.constant 0 : i32
    %c0_i32_0 = arith.constant 0 : i32
    %c0_i32_1 = arith.constant 0 : i32
    return %c0_i32, %c0_i32_0 : i32, i32
  }
  func.func @transform_18(%arg0: i32, %arg1: i32) -> (i32, i32) {
    %c0_i32 = arith.constant 0 : i32
    %c0_i32_0 = arith.constant 0 : i32
    %c0_i32_1 = arith.constant 0 : i32
    return %c0_i32, %c0_i32_0 : i32, i32
  }
  func.func @transform_19(%arg0: i32, %arg1: i32) -> (i32, i32, i32) {
    %c0_i32 = arith.constant 0 : i32
    %c0_i32_0 = arith.constant 0 : i32
    %c0_i32_1 = arith.constant 0 : i32
    return %arg0, %c0_i32, %c0_i32_0 : i32, i32, i32
  }
}

</mosaic_0001>

<bundles_post_ra>
// kernel: tpu_custom_call.1
= control target key start
LH: loop header
LB: loop body
LE: loop exit
PB: predicated region body
PF: predicated region fallthrough
CT: control target
= control target key end

     0   :  { %s2937_s0 = inlined_call_operand.vmem [shape: bf16[2,8,10], index: 0, kind: input, shape index: {}]   ;;  %s2938_s1 = inlined_call_operand.vmem [shape: f32[2,8,32], index: 1, kind: input, shape index: {}]   ;;  %s2939_s2 = inlined_call_operand.vmem [shape: f32[2,1,8], index: 2, kind: input, shape index: {}]   ;;  %s2940_s3 = inlined_call_operand.vmem [shape: bf16[10,32], index: 3, kind: input, shape index: {}]   ;;  %s2941_s4 = inlined_call_operand.vmem [shape: f32[1,32], index: 4, kind: input, shape index: {}]   ;;  %s2942_s5 = inlined_call_operand.vmem [shape: bf16[2,32,96], index: 5, kind: input, shape index: {}]   ;;  %s2943_s6 = inlined_call_operand.vmem [shape: f32[2,1,96], index: 6, kind: input, shape index: {}]   ;;  %s2944_s7 = inlined_call_operand.vmem [shape: bf16[2,32,32], index: 7, kind: input, shape index: {}]   ;;  %s2945_s8 = inlined_call_operand.vmem [shape: f32[2,1,32], index: 8, kind: input, shape index: {}]   ;;  %s2946_s9 = inlined_call_operand.vmem [shape: bf16[2,32,128], index: 9, kind: input, shape index: {}]   ;;  %s2947_s10 = inlined_call_operand.vmem [shape: f32[2,1,128], index: 10, kind: input, shape index: {}]   ;;  %s2948_s11 = inlined_call_operand.vmem [shape: bf16[2,128,32], index: 11, kind: input, shape index: {}]   ;;  %s2949_s12 = inlined_call_operand.vmem [shape: f32[2,1,32], index: 12, kind: input, shape index: {}]   ;;  %s2950_s13 = inlined_call_operand.vmem [shape: f32[2,1,32], index: 13, kind: input, shape index: {}]   ;;  %s2951_s14 = inlined_call_operand.vmem [shape: f32[2,1,32], index: 14, kind: input, shape index: {}]   ;;  %s2952_s15 = inlined_call_operand.vmem [shape: f32[2,1,32], index: 15, kind: input, shape index: {}]   ;;  %s2953_s16 = inlined_call_operand.vmem [shape: f32[2,1,32], index: 16, kind: input, shape index: {}]   ;;  %s2954_s17 = inlined_call_operand.vmem [shape: f32[1,32], index: 17, kind: input, shape index: {}]   ;;  %s2955_s18 = inlined_call_operand.vmem [shape: f32[1,32], index: 18, kind: input, shape index: {}]   ;;  %s2956_s19 = inlined_call_operand.hbm [shape: f32[2,8,32], index: 19, kind: output, shape index: {}]  }
   0x1   :  { %2973 = sst [smem:[#allocation19_spill]] %s2937_s0 }
   0x2   :  { %2974 = sst [smem:[#allocation20_spill]] %s2938_s1 }
   0x3   :  { %2975 = sst [smem:[#allocation21_spill]] %s2939_s2 }
   0x4   :  { %2976 = sst [smem:[#allocation22_spill]] %s2940_s3 }
   0x5   :  { %2977 = sst [smem:[#allocation23_spill]] %s2941_s4 }
   0x6   :  { %2978 = sst [smem:[#allocation24_spill]] %s2942_s5 }
   0x7   :  { %2979 = sst [smem:[#allocation25_spill]] %s2944_s7 }
   0x8   :  { %2980 = sst [smem:[#allocation26_spill]] %s2946_s9 }
   0x9   :  { %2981 = sst [smem:[#allocation27_spill]] %s2947_s10 }
   0xa   :  { %2982 = sst [smem:[#allocation28_spill]] %s2949_s12 }
   0xb   :  { %2983 = sst [smem:[#allocation29_spill]] %s2951_s14 }
   0xc   :  { %2984 = sst [smem:[#allocation30_spill]] %s2952_s15 }
   0xd   :  { %2985 = sst [smem:[#allocation31_spill]] %s2953_s16 }
   0xe   :  { %2986 = sst [smem:[#allocation32_spill]] %s2954_s17 }
   0xf   :  { %2987 = sst [smem:[#allocation33_spill]] %s2955_s18 }
  0x10   :  { %2988 = sst [smem:[#allocation34_spill]] %s2956_s19 }
  0x11   :  { %24 = vsyncpa [#allocation3], 0 }
  0x12   :  { %26 = vsyncpa [#allocation3 + $0x1], 0  ;;  %s2553_s0 = smov 0   ;;  %s2555_s30 = smov 0  }
  0x13   :  { %s2557_s20 = smov 0   ;;  %s2559_s21 = smov 0  }
  0x14   :  { %s2561_s1 = smov 0   ;;  %s2563_s22 = smov 0  }
  0x15   :  { %s2565_s2 = smov 0   ;;  %s2567_s23 = smov 0  }
  0x16 LB: > { %2989 = sst [smem:[#allocation5_spill]] %s2404_s0  ;;  %s2012_s24 = sadd.s32 4294967295, %s2432_s23   ;;  %s2432_s23 = sphi %s2567_s23, %s32_s23   ;;  %s2428_s2 = sphi %s2565_s2, %s3049_s2   ;;  %s2424_s22 = sphi %s2563_s22, %s3048_s22   ;;  %s2420_s1 = sphi %s2561_s1, %s3047_s1   ;;  %s2416_s21 = sphi %s2559_s21, %s3046_s21   ;;  %s2412_s20 = sphi %s2557_s20, %s3045_s20   ;;  %s2408_s30 = sphi %s2555_s30, %s3044_s30   ;;  %s2404_s0 = sphi %s2553_s0, %s3043_s0  }
  0x17   : > { %2990 = sst [smem:[#allocation6_spill]] %s2408_s30  ;;  %s2013_s25 = sadd.s32 4294967294, %s2432_s23  }
  0x18   : > { %2991 = sst [smem:[#allocation7_spill]] %s2412_s20  ;;  %s41_s3 = sadd.s32 1, %s2424_s22 }
  0x19   : > { %2992 = sst [smem:[#allocation8_spill]] %s2416_s21  ;;  %p42_p0 = scmp.ge.s32.totalorder %s41_s3, 2 }
  0x1a   : > { %2993 = sst [smem:[#allocation9_spill]] %s2420_s1  ;;  %s44_s26 = sadd.s32 1, %s2428_s2 }
  0x1b   : > { %2994 = sst [smem:[#allocation10_spill]] %s2424_s22  ;;  %p535_p1 = scmp.ne.s32.totalorder %s2412_s20, %s2408_s30 }
  0x1c   : > { %2995 = sst [smem:[#allocation11_spill]] %s2428_s2  ;;  %p536_p2 = scmp.eq.s32.totalorder %s2012_s24, 3 }
  0x1d   : > { %2996 = sst [smem:[#allocation12_spill]] %s2432_s23  ;;  %s3051_s3 = smov (%p42_p0, %s41_s3), 0 }
  0x1e   : > { %2997 = sst [smem:[#allocation13_spill]] %s3051_s3  ;;  %s3053_s26 = smov (!%p42_p0, %s44_s26), %s2428_s2 }
  0x1f   : > { %p2602_p3 = por %p536_p2, %p535_p1  ;;  %p541_p4 = scmp.ne.s32.totalorder %s2408_s30, %s2404_s0 }
  0x20   : > { %p46_p5 = scmp.ge.s32.totalorder %s3053_s26, 2  ;;  %p542_p6 = scmp.eq.s32.totalorder %s2013_s25, 3 }
  0x21   : > { %s2998_s27 = scalar_select %p2602_p3, 1, 0 }
  0x22   : > { %p2016_p7 = scmp.ge.s32.totalorder %s2432_s23, 1  ;;  %p672_p8 = scmp.lt.s32.totalorder %s2432_s23, 5 }
  0x23   : > { %2999 = sst [smem:[#allocation14_spill]] %s2998_s27  ;;  %s3055_s26 = smov (%p46_p5, %s3053_s26), 0 }
  0x24   : > { %3000 = sst [smem:[#allocation15_spill]] %s3055_s26  ;;  %p2612_p9 = por %p542_p6, %p541_p4 }
  0x25   : > { %p673_p10 = pnand %p2016_p7, %p672_p8  ;;  %s522_s29 = ssub.s32 %s2428_s2, %s3055_s26 }
  0x26   : > { %s3001_s28 = scalar_select %p2612_p9, 1, 0 }
  0x27   : > { %s525_s24 = sadd.s32 1, %s2412_s20  ;;  %p523_p11 = scmp.eq.s32.totalorder %s522_s29, 0 }
  0x28   : > { %3002 = sst [smem:[#allocation16_spill]] %s3001_s28  ;;  %676 = sbr.rel (%p673_p10) target bundleno = 3185 (0xc71), region = 96 }
  0x29   : > { %s2620_s3 = scalar_select %p523_p11, %s2412_s20, %s525_s24  }
  0x2b   : > { %3003 = sst [smem:[#allocation17_spill]] %s2620_s3 }
  0x2f   : > { %s2961_s25 = sand.u32 1, %s2408_s30   ;;  %p778_p12 = scmp.lt.s32.totalorder %s2420_s1, 1 }
  0x30   : > { %s2017_s22 = sshll.u32 %s2961_s25, 3  ;;  %p789_p13 = scmp.lt.s32.totalorder %s2416_s21, 1 }
  0x31   : > { %s2628_s0 = scalar_select %p778_p12, %s2420_s1, 1 }
  0x32   : > { %s2631_s29 = scalar_select %p789_p13, %s2416_s21, 1 }
  0x33   : > { %s2018_s24 = sshll.u32 %s2628_s0, 2  ;;  %s2019_s26 = sshll.u32 %s2628_s0, 3 }
  0x34   : > { %s3004_s3 = sld [smem:[#allocation19_spill]]  ;;  %s3005_s19 = sld [smem:[#allocation20_spill]] }
  0x35   : > { %s2074_s4 = sshll.u32 %s2631_s29, 4  ;;  %s3007_s5 = sld [smem:[#allocation24_spill]] }
  0x36   : > { %s3008_s7 = sld [smem:[#allocation25_spill]]  ;;  %s3009_s9 = sld [smem:[#allocation26_spill]] }
  0x37   : > { %s2077_s14 = sshll.u32 %s2631_s29, 6  ;;  %s823_s18 = scalar_lea.vmem %s2950_s13, %s2631_s29 }
  0x38   : > { %s3013_s30 = sld [smem:[#allocation29_spill]]  ;;  %s3014_s17 = sld [smem:[#allocation30_spill]] }
  0x39   : > { %s3015_s2 = sld [smem:[#allocation31_spill]]  ;;  %s2701_s12 = scalar_lea.vmem [#allocation2], %s2017_s22 }
  0x3a   : > { %s781_s20 = scalar_lea.vmem %s3004_s3, %s2018_s24  ;;  %s2641_s27 = scalar_lea.vmem %s3005_s19, %s2019_s26 }
  0x3b   : > { %s2651_s15 = scalar_lea.vmem %s3007_s5, %s2074_s4  ;;  %s3016_s5 = sld [smem:[#allocation8_spill]] }
  0x3c   : > { %s2660_s23 = scalar_lea.vmem %s3008_s7, %s2074_s4  ;;  %s2669_s28 = scalar_lea.vmem %s3009_s9, %s2074_s4 }
  0x3d   : > { %3010 = sst [smem:[#allocation18_spill]] %s2669_s28  ;;  %s2683_s7 = scalar_lea.vmem %s2948_s11, %s2077_s14 }
  0x3e   : > { %s826_s9 = scalar_lea.vmem %s3013_s30, %s2631_s29  ;;  %s829_s10 = scalar_lea.vmem %s3014_s17, %s2631_s29 }
  0x3f   : > { %s832_s25 = scalar_lea.vmem %s3015_s2, %s2631_s29 }
  0x41   : > { %p2028_p0 = scmp.ne.s32.totalorder %s3016_s5, 0 }
  0x42   : > { %vm857_vm0 = vcmask (!%p2028_p0), 1044480   ;;  %v2434_v0 = vmov (!%p2028_p0), 0.0   ;;  %s3017_s30 = sld [smem:[#allocation22_spill]] (!%p2028_p0)  ;;  %vm2435_vm1 = vmmov (!%p2028_p0), 0   ;;  %v838_v3 = vld [vmem:[%s781_s20] sm:$0xf] (!%p2028_p0) }
  0x43   : > { %837 = sbr.rel (%p2028_p0) target bundleno = 294 (0x126), region = 100  ;;  %2114 = vmatprep.subr.bf16.mxu0 (!%p2028_p0), %v2434_v0  ;;  %2116 = vmatprep.mubr.msk.bf16.mxu0 (!%p2028_p0), %vm2435_vm1, %v2434_v0  ;;  %vm853_vm2 = vcmask (!%p2028_p0), 80896   ;;  %s3018_s28 = sld [smem:[#allocation23_spill]] (!%p2028_p0)  ;;  %v901_v6 = vld [vmem:[%s2641_s27] sm:$0xff] (!%p2028_p0)  ;;  %vm903_vm3 = vcmask (!%p2028_p0), 261120  }
  0x48   : > { %v2301_v1 = vld [vmem:[%s3017_s30] sm:$0x1f] (!%p2028_p0)  }
  0x49   : > { %v859_v2 = vsel (!%p2028_p0), %vm857_vm0, %v2301_v1, 0  ;;  %v2029_v4 = vld [vmem:[%s3018_s28] ss:$0 sm:$0xff] (!%p2028_p0) }
  0x4a   : > { %2115 = vmatpush3.bf16.msra.mxu0 %v859_v2 }
  0x4d   : > { %2117 = vmatmul.mubr.msk.bf16.vlgmr.msra.gmra.mrb[0].mxu0 %vm853_vm2, %v838_v3 }
 0x120   : > { %v895_v5 = vpop.f32.mrb[0].mxu0 }
 0x121   : > { %v896_v7 = vadd.f32 %v2029_v4, %v895_v5  ;;  %v2118_v8 = vpop.f32.mrb[1].mxu0 }
 0x122   : > { %v898_v9 = vpop.f32.mrb[2].mxu0 }
 0x123   : > { %v902_v10 = vadd.f32 %v901_v6, %v896_v7  ;;  %v2119_v11 = vpop.f32.mrb[3].mxu0 }
 0x125   : > { %904 = vst.msk [vmem:[%s2701_s12] sm:$0xff] %vm903_vm3, %v902_v10 }
 0x126 PF: > { %v2302_v12 = vld [vmem:[%s2651_s15] sm:$0xff]   ;;  %v2436_v13 = vmov 0.0   ;;  %v2303_v14 = vld [vmem:[%s2651_s15 + $0x8] sm:$0xff]   ;;  %vm2437_vm4 = vmmov 0   ;;  %vm930_vm5 = vcmask 261120   ;;  %s3019_s27 = scalar_lea.vmem %s2943_s6, %s2631_s29  ;;  %s2438_s19 = smov 120  }
 0x127   : > { %2120 = vmatprep.subr.bf16.mxu0 %v2436_v13  ;;  %2140 = vmatprep.subr.bf16.mxu1 %v2436_v13  ;;  %v2032_v17 = vld [vmem:[%s3019_s27] ss:$0 sm:$0xff]  ;;  %s2439_s26 = smov 96   ;;  %s2440_s4 = smov 80   ;;  %vm985_vm6 = vcmask 64512   ;;  %vm1049_vm7 = vcmask 1043456  }
 0x128   : > { %2121 = vmatpush3.bf16.msra.mxu0 %v2302_v12  ;;  %2124 = vmatprep.mubr.msk.bf16.mxu0 %vm2437_vm4, %v2436_v13  ;;  %s2441_s1 = smov 88   ;;  %s2442_s16 = smov 72   ;;  %vm1436_vm8 = vcmask 130048   ;;  %vm1438_vm9 = vcmask 195584  }
 0x129   : > { %2122 = vmatprep.subr.bf16.mxu0 %v2436_v13  ;;  %2142 = vmatprep.mubr.msk.bf16.mxu1 %vm2437_vm4, %v2436_v13  ;;  %s2443_s21 = smov 112   ;;  %s2444_s3 = smov 104  }
 0x12a   : > { %s3020_s14 = sld [smem:[#allocation21_spill]]  ;;  %s2446_s30 = smov 64  }
 0x12b   : > { %s2447_s17 = smov 40   ;;  %s2448_s22 = smov 48  }
 0x12c   : > { %v2719_v15 = vld [vmem:[%s2701_s12] sm:$0xff]  ;;  %2123 = vmatpush3.bf16.msra.mxu0 %v2303_v14  ;;  %s2449_s28 = smov 8   ;;  %s2450_s15 = smov 16  }
 0x12d   : > { %v906_v16 = vpack.c.bf16 %v2719_v15, %v2719_v15  ;;  %2128 = vmatprep.subr.bf16.mxu0 %v2436_v13  ;;  %s2451_s20 = smov 24   ;;  %s3025_s5 = sld [smem:[#allocation27_spill]] }
 0x12f   : > { %2125 = vmatmul.mubr.msk.bf16.vlgmr.msra.gmra.mrb[0].mxu0 %vm930_vm5, %v906_v16 }
 0x130   : > { %2130 = vmatprep.mubr.msk.bf16.mxu0 %vm2437_vm4, %v2436_v13  ;;  %s3021_s24 = scalar_lea.vmem %s3020_s14, %s2628_s0  ;;  %s2445_s0 = smov 56  }
 0x131   : > { %v2036_v35 = vld [vmem:[%s3021_s24] ss:$0 sm:$0xff] }
 0x133   : > { %s3026_s14 = scalar_lea.vmem %s3025_s5, %s2631_s29 }
 0x202   : > { %v968_v18 = vpop.f32.mrb[0].mxu0 }
 0x203   : > { %v969_v19 = vadd.f32 %v2032_v17, %v968_v18  ;;  %v2126_v20 = vpop.f32.mrb[1].mxu0 }
 0x204   : > { %v971_v21 = vpop.f32.mrb[2].mxu0 }
 0x205   : > { %v2735_v22 = vpack.c.bf16 %v969_v19, %v969_v19  ;;  %v2127_v23 = vpop.f32.mrb[3].mxu0 }
 0x207   : > { %1093 = vrot.lane.b32.xlu1 %v2735_v22, %s2438_s19  ;;  %983 = vrot.lane.b32.xlu0 %v2735_v22, %s2439_s26  ;;  %s3022_s19 = scalar_lea.vmem %s2945_s8, %s2631_s29  ;;  %s3023_s26 = sld [smem:[#allocation18_spill]] }
 0x20b   : > { %1205 = vrot.lane.b32.xlu1 %v2735_v22, %s2440_s4  ;;  %1095 = vrot.lane.b32.xlu0 %v2735_v22, %s2441_s1 }
 0x20f   : > { %1315 = vrot.lane.b32.xlu1 %v2735_v22, %s2442_s16  ;;  %1203 = vrot.lane.b32.xlu0 %v2735_v22, %s2443_s21 }
 0x213   : > { %1313 = vrot.lane.b32.xlu0 %v2735_v22, %s2444_s3 }
 0x279   : > { %v984_v24 = vpop.permute.xlu0 %983  ;;  %v1094_v26 = vpop.permute.xlu1 %1093 }
 0x27a   : > { %v990_v25 = vsel %vm985_vm6, %v984_v24, 0 }
 0x27b   : > { %2129 = vmatpush3.bf16.xpose.msra.mxu0 %v990_v25 }
 0x27c   : > { %2134 = vmatprep.subr.bf16.mxu0 %v2436_v13 }
 0x27d   : > { %v1096_v27 = vpop.permute.xlu0 %1095  ;;  %v1206_v29 = vpop.permute.xlu1 %1205 }
 0x27e   : > { %v1101_v28 = vsel %vm985_vm6, %v1096_v27, 0  ;;  %v1211_v30 = vsel %vm985_vm6, %v1206_v29, 0 }
 0x27f   : > { %2141 = vmatpush3.bf16.xpose.msra.mxu1 %v1101_v28 }
 0x280   : > { %2152 = vmatprep.subr.bf16.mxu1 %v2436_v13 }
 0x281   : > { %v1316_v31 = vpop.permute.xlu1 %1315  ;;  %v1204_v32 = vpop.permute.xlu0 %1203 }
 0x282   : > { %2131 = vmatmul.mubr.msk.bf16.vlgmr.msra.gmra.mrb[4].mxu0 %vm985_vm6, %v2735_v22  ;;  %v1321_v33 = vsel %vm985_vm6, %v1316_v31, 0 }
 0x283   : > { %2136 = vmatprep.mubr.msk.bf16.mxu0 %vm2437_vm4, %v2436_v13 }
 0x285   : > { %v1314_v34 = vpop.permute.xlu0 %1313 }
 0x286   : > { %2143 = vmatmul.mubr.msk.bf16.vlgmr.msra.gmra.mrb[0].mxu1 %vm985_vm6, %v1094_v26 }
 0x287   : > { %2153 = vmatpush3.bf16.xpose.msra.mxu1 %v1211_v30  ;;  %2154 = vmatprep.mubr.msk.bf16.mxu1 %vm2437_vm4, %v2436_v13 }
 0x288   : > { %2164 = vmatprep.subr.bf16.mxu1 %v2436_v13 }
 0x28e   : > { %2155 = vmatmul.mubr.msk.bf16.vlgmr.msra.gmra.mrb[4].mxu1 %vm985_vm6, %v1204_v32 }
 0x28f   : > { %2165 = vmatpush3.bf16.xpose.msra.mxu1 %v1321_v33  ;;  %2166 = vmatprep.mubr.msk.bf16.mxu1 %vm2437_vm4, %v2436_v13 }
 0x290   : > { %2176 = vmatprep.subr.bf16.mxu1 %v2436_v13 }
 0x296   : > { %2167 = vmatmul.mubr.msk.bf16.vlgmr.msra.gmra.mrb[8].mxu1 %vm985_vm6, %v1314_v34 }
 0x297   : > { %2180 = vmatprep.mubr.msk.bf16.mxu1 %vm2437_vm4, %v2436_v13 }
 0x355   : > { %v1026_v36 = vpop.f32.mrb[4].mxu0 }
 0x356   : > { %v1027_v37 = vadd.f32 %v2036_v35, %v1026_v36  ;;  %v2132_v38 = vpop.f32.mrb[5].mxu0 }
 0x357   : > { %v1029_v39 = vpop.f32.mrb[6].mxu0 }
 0x358   : > { %v2133_v40 = vpop.f32.mrb[7].mxu0  ;;  %v1032_v41 = vsel %vm985_vm6, %v1027_v37, -inf }
 0x359   : > { %v1137_v42 = vpop.f32.mrb[0].mxu1  ;;  %1033 = vmax.xlane.f32.xlu1 %v1032_v41 }
 0x35a   : > { %v1138_v43 = vadd.f32 %v2036_v35, %v1137_v42  ;;  %v2144_v44 = vpop.f32.mrb[1].mxu1 }
 0x35b   : > { %v1140_v45 = vpop.f32.mrb[2].mxu1 }
 0x35c   : > { %v2145_v46 = vpop.f32.mrb[3].mxu1  ;;  %v1143_v47 = vsel %vm985_vm6, %v1138_v43, -inf }
 0x35d   : > { %1144 = vmax.xlane.f32.xlu0 %v1143_v47 }
 0x361   : > { %v1247_v48 = vpop.f32.mrb[4].mxu1 }
 0x362   : > { %v1248_v49 = vadd.f32 %v2036_v35, %v1247_v48  ;;  %v2156_v50 = vpop.f32.mrb[5].mxu1 }
 0x363   : > { %v1250_v51 = vpop.f32.mrb[6].mxu1  ;;  %v2304_v50 = vld [vmem:[%s2660_s23] sm:$0xff]  }
 0x364   : > { %v2157_v52 = vpop.f32.mrb[7].mxu1  ;;  %v1253_v53 = vsel %vm985_vm6, %v1248_v49, -inf  ;;  %2177 = vmatpush3.bf16.msra.mxu1 %v2304_v50  ;;  %v2305_v51 = vld [vmem:[%s2660_s23 + $0x8] sm:$0xff]   ;;  %s3031_s23 = sld [smem:[#allocation8_spill]] }
 0x365   : > { %1254 = vmax.xlane.f32.xlu0 %v1253_v53  ;;  %2178 = vmatprep.subr.bf16.mxu1 %v2436_v13 }
 0x368   : > { %2179 = vmatpush3.bf16.msra.mxu1 %v2305_v51 }
 0x369   : > { %v1357_v54 = vpop.f32.mrb[8].mxu1  ;;  %2192 = vmatprep.subr.bf16.mxu1 %v2436_v13 }
 0x36a   : > { %v1358_v55 = vadd.f32 %v2036_v35, %v1357_v54  ;;  %v2168_v56 = vpop.f32.mrb[9].mxu1  ;;  %p2066_p1 = scmp.eq.s32.totalorder %s3031_s23, 1 }
 0x36b   : > { %v1360_v57 = vpop.f32.mrb[10].mxu1 }
 0x36c   : > { %v2169_v58 = vpop.f32.mrb[11].mxu1  ;;  %v1363_v59 = vsel %vm985_vm6, %v1358_v55, -inf }
 0x36d   : > { %1364 = vmax.xlane.f32.xlu1 %v1363_v59 }
 0x3e6   : > { %v1034_v60 = vpop.xlane.xlu1 %1033 }
 0x3e7   : > { %v1035_v61 = vsub.f32 %v1027_v37, %v1034_v60 }
 0x3e9   : > { %v1036_v62 = vmul.f32 1.442695, %v1035_v61 }
 0x3ea   : > { %v1145_v63 = vpop.xlane.xlu0 %1144 }
 0x3eb   : > { %2316 = vpow2.f32 %v1036_v62  ;;  %v1146_v0 = vsub.f32 %v1138_v43, %v1145_v63 }
 0x3ed   : > { %v1147_v1 = vmul.f32 1.442695, %v1146_v0 }
 0x3ef   : > { %2318 = vpow2.f32 %v1147_v1 }
 0x3f2   : > { %v1255_v2 = vpop.xlane.xlu0 %1254 }
 0x3f3   : > { %v1256_v3 = vsub.f32 %v1248_v49, %v1255_v2 }
 0x3f5   : > { %v2317_v4 = vpop.eup %2316  ;;  %v1257_v5 = vmul.f32 1.442695, %v1256_v3  ;;  %v2045_v3 = vld [vmem:[%s3022_s19] ss:$0 sm:$0xff] }
 0x3f6   : > { %v1038_v6 = vsel %vm985_vm6, %v2317_v4, 0.0 }
 0x3f7   : > { %2320 = vpow2.f32 %v1257_v5  ;;  %1039 = vadd.xlane.f32.xlu0 %v1038_v6 }
 0x3f9   : > { %v2319_v7 = vpop.eup %2318 }
 0x3fa   : > { %v1149_v8 = vsel %vm985_vm6, %v2319_v7, 0.0  ;;  %v1365_v11 = vpop.xlane.xlu1 %1364 }
 0x3fb   : > { %1150 = vadd.xlane.f32.xlu1 %v1149_v8  ;;  %v1366_v12 = vsub.f32 %v1358_v55, %v1365_v11 }
 0x3fd   : > { %v1367_v14 = vmul.f32 1.442695, %v1366_v12 }
 0x3ff   : > { %2322 = vpow2.f32 %v1367_v14 }
 0x401   : > { %v2321_v9 = vpop.eup %2320 }
 0x402   : > { %v1259_v10 = vsel %vm985_vm6, %v2321_v9, 0.0 }
 0x403   : > { %1260 = vadd.xlane.f32.xlu0 %v1259_v10 }
 0x409   : > { %v2323_v16 = vpop.eup %2322 }
 0x40a   : > { %v1369_v17 = vsel %vm985_vm6, %v2323_v16, 0.0 }
 0x40c   : > { %1155 = vrot.lane.b32.xlu1 %v2735_v22, %s2445_s0  ;;  %s3027_s0 = sld [smem:[#allocation28_spill]] }
 0x419   : > { %1044 = vrot.lane.b32.xlu0 %v2735_v22, %s2446_s30  ;;  %s3028_s30 = scalar_lea.vmem %s3027_s0, %s2631_s29 }
 0x41d   : > { %1375 = vrot.lane.b32.xlu0 %v2735_v22, %s2447_s17 }
 0x430   : > { %1370 = vadd.xlane.f32.xlu1 %v1369_v17 }
 0x441   : > { %1265 = vrot.lane.b32.xlu1 %v2735_v22, %s2448_s22 }
 0x484   : > { %v1040_v18 = vpop.xlane.xlu0 %1039 }
 0x485   : > { %2324 = vrcp.f32 %v1040_v18  ;;  %v2306_v18 = vld [vmem:[%s3023_s26] sm:$0xff]  }
 0x488   : > { %v1151_v19 = vpop.xlane.xlu1 %1150 }
 0x489   : > { %2326 = vrcp.f32 %v1151_v19  ;;  %v2307_v19 = vld [vmem:[%s3023_s26 + $0x8] sm:$0xff]  }
 0x48c   : > { %v1156_v26 = vpop.permute.xlu1 %1155 }
 0x48d   : > { %v1161_v29 = vsel %vm1049_vm7, %v1156_v26, 0 }
 0x48f   : > { %v2325_v20 = vpop.eup %2324 }
 0x490   : > { %v1261_v21 = vpop.xlane.xlu0 %1260  ;;  %v1042_v23 = vmul.f32 %v2325_v20, %v2317_v4  ;;  %v2309_v20 = vld [vmem:[%s2683_s7 + $0x8] sm:$0xff]  }
 0x491   : > { %2328 = vrcp.f32 %v1261_v21  ;;  %v2310_v21 = vld [vmem:[%s2683_s7 + $0x10] sm:$0xff]  }
 0x492   : > { %v1043_v27 = vpack.c.bf16 %v1042_v23, %v1042_v23  ;;  %v2311_v23 = vld [vmem:[%s2683_s7 + $0x18] sm:$0xff]  }
 0x493   : > { %v2327_v28 = vpop.eup %2326 }
 0x494   : > { %v1045_v24 = vpop.permute.xlu0 %1044  ;;  %v1153_v22 = vmul.f32 %v2327_v28, %v2319_v7 }
 0x495   : > { %v1051_v25 = vsel %vm1049_vm7, %v1045_v24, 0  ;;  %v2312_v24 = vld [vmem:[%s2683_s7 + $0x20] sm:$0xff]  }
 0x496   : > { %2135 = vmatpush3.bf16.msra.mxu0 %v1051_v25  ;;  %v1154_v30 = vpack.c.bf16 %v1153_v22, %v1153_v22  ;;  %v2313_v25 = vld [vmem:[%s2683_s7 + $0x28] sm:$0xff]   ;;  %v2049_v22 = vld [vmem:[%s823_s18] ss:$0 sm:$0xff] }
 0x497   : > { %2146 = vmatprep.subr.bf16.mxu0 %v2436_v13 }
 0x498   : > { %v1376_v36 = vpop.permute.xlu0 %1375 }
 0x499   : > { %2137 = vmatmul.mubr.msk.bf16.vlgmr.msra.gmra.mrb[8].mxu0 %vm985_vm6, %v1043_v27  ;;  %v1381_v38 = vsel %vm1049_vm7, %v1376_v36, 0  ;;  %v2315_v36 = vld [vmem:[%s2683_s7 + $0x38] sm:$0xff]  }
 0x49a   : > { %2147 = vmatpush3.bf16.msra.mxu0 %v1161_v29  ;;  %2148 = vmatprep.mubr.msk.bf16.mxu0 %vm2437_vm4, %v2436_v13 }
 0x49b   : > { %2158 = vmatprep.subr.bf16.mxu0 %v2436_v13  ;;  %v2329_v31 = vpop.eup %2328 }
 0x49c   : > { %v1263_v33 = vmul.f32 %v2329_v31, %v2321_v9  ;;  %v2050_v31 = vld [vmem:[%s826_s9] ss:$0 sm:$0xff] }
 0x49e   : > { %v1264_v37 = vpack.c.bf16 %v1263_v33, %v1263_v33 }
 0x4a1   : > { %2149 = vmatmul.mubr.msk.bf16.vlgmr.msra.gmra.mrb[12].mxu0 %vm985_vm6, %v1154_v30 }
 0x4a2   : > { %2160 = vmatprep.mubr.msk.bf16.mxu0 %vm2437_vm4, %v2436_v13 }
 0x4bd   : > { %v1371_v32 = vpop.xlane.xlu1 %1370 }
 0x4be   : > { %2330 = vrcp.f32 %v1371_v32 }
 0x4c1   : > { %v1266_v34 = vpop.permute.xlu1 %1265 }
 0x4c2   : > { %v1271_v35 = vsel %vm1049_vm7, %v1266_v34, 0 }
 0x4c3   : > { %2159 = vmatpush3.bf16.msra.mxu0 %v1271_v35  ;;  %v2314_v35 = vld [vmem:[%s2683_s7 + $0x30] sm:$0xff]  }
 0x4c4   : > { %2170 = vmatprep.subr.bf16.mxu0 %v2436_v13 }
 0x4c6   : > { %2161 = vmatmul.mubr.msk.bf16.vlgmr.msra.gmra.mrb[16].mxu0 %vm985_vm6, %v1264_v37  ;;  %v2051_v37 = vld [vmem:[%s3026_s14] ss:$0 sm:$0xff] }
 0x4c7   : > { %2171 = vmatpush3.bf16.msra.mxu0 %v1381_v38  ;;  %2172 = vmatprep.mubr.msk.bf16.mxu0 %vm2437_vm4, %v2436_v13 }
 0x4c8   : > { %v2331_v39 = vpop.eup %2330  ;;  %2184 = vmatprep.subr.bf16.mxu0 %v2436_v13 }
 0x4c9   : > { %v1373_v40 = vmul.f32 %v2331_v39, %v2323_v16 }
 0x4cb   : > { %v1374_v41 = vpack.c.bf16 %v1373_v40, %v1373_v40 }
 0x4ce   : > { %2173 = vmatmul.mubr.msk.bf16.vlgmr.msra.gmra.mrb[20].mxu0 %vm985_vm6, %v1374_v41 }
 0x4cf   : > { %2188 = vmatprep.mubr.msk.bf16.mxu0 %vm2437_vm4, %v2436_v13  ;;  %2185 = vmatpush3.bf16.msra.mxu0 %v2306_v18 }
 0x4d0   : > { %2186 = vmatprep.subr.bf16.mxu0 %v2436_v13 }
 0x4d3   : > { %2187 = vmatpush3.bf16.msra.mxu0 %v2307_v19 }
 0x56c   : > { %v1087_v42 = vpop.f32.mrb[8].mxu0 }
 0x56d   : > { %v2138_v43 = vpop.f32.mrb[9].mxu0 }
 0x56e   : > { %v1090_v44 = vpop.f32.mrb[10].mxu0 }
 0x56f   : > { %v2139_v45 = vpop.f32.mrb[11].mxu0 }
 0x574   : > { %v1197_v46 = vpop.f32.mrb[12].mxu0 }
 0x575   : > { %1424 = vrot.lane.b32.xlu1 %v1197_v46, %s2449_s28  ;;  %v2150_v47 = vpop.f32.mrb[13].mxu0 }
 0x576   : > { %v1200_v48 = vpop.f32.mrb[14].mxu0 }
 0x577   : > { %v2151_v49 = vpop.f32.mrb[15].mxu0 }
 0x599   : > { %v1307_v52 = vpop.f32.mrb[16].mxu0 }
 0x59a   : > { %1428 = vrot.lane.b32.xlu0 %v1307_v52, %s2450_s15  ;;  %v2162_v53 = vpop.f32.mrb[17].mxu0 }
 0x59b   : > { %v1310_v54 = vpop.f32.mrb[18].mxu0 }
 0x59c   : > { %v2163_v55 = vpop.f32.mrb[19].mxu0 }
 0x5a1   : > { %v1417_v56 = vpop.f32.mrb[20].mxu0 }
 0x5a2   : > { %1432 = vrot.lane.b32.xlu1 %v1417_v56, %s2451_s20  ;;  %v2174_v57 = vpop.f32.mrb[21].mxu0 }
 0x5a3   : > { %v1420_v58 = vpop.f32.mrb[22].mxu0 }
 0x5a4   : > { %v2175_v59 = vpop.f32.mrb[23].mxu0 }
 0x5e7   : > { %v1425_v60 = vpop.permute.xlu1 %1424 }
 0x5e8   : > { %v1435_v62 = vsel %vm985_vm6, %v1087_v42, %v1425_v60 }
 0x60c   : > { %v1429_v61 = vpop.permute.xlu0 %1428 }
 0x60d   : > { %v1437_v63 = vsel %vm1436_vm8, %v1435_v62, %v1429_v61  ;;  %v2064_v61 = vld [vmem:[%s829_s10] ss:$0 sm:$0xff] }
 0x614   : > { %v1433_v0 = vpop.permute.xlu1 %1432 }
 0x615   : > { %v1439_v1 = vsel %vm1438_vm9, %v1437_v63, %v1433_v0  ;;  %v2065_v63 = vld [vmem:[%s832_s25] ss:$0 sm:$0xff] }
 0x616   : > { %v1440_v2 = vpack.c.bf16 %v1439_v1, %v1439_v1 }
 0x618   : > { %2181 = vmatmul.mubr.msk.bf16.vlgmr.msra.gmra.mrb[12].mxu1 %vm930_vm5, %v1440_v2 }
 0x619   : > { %2208 = vmatprep.mubr.msk.bf16.mxu1 %vm2437_vm4, %v2436_v13 }
 0x6eb   : > { %v1501_v4 = vpop.f32.mrb[12].mxu1 }
 0x6ec   : > { %v1502_v5 = vadd.f32 %v2045_v3, %v1501_v4  ;;  %v2182_v6 = vpop.f32.mrb[13].mxu1 }
 0x6ed   : > { %v1504_v7 = vpop.f32.mrb[14].mxu1 }
 0x6ee   : > { %v2183_v8 = vpop.f32.mrb[15].mxu1  ;;  %v1507_v9 = vadd.f32 %v1502_v5, %v2719_v15  ;;  %v2308_v15 = vld [vmem:[%s2683_s7] sm:$0xff]  }
 0x6ef   : > { %2193 = vmatpush3.bf16.msra.mxu1 %v2308_v15 }
 0x6f0   : > { %v1510_v10 = vsel %vm930_vm5, %v1507_v9, 0.0  ;;  %2194 = vmatprep.subr.bf16.mxu1 %v2436_v13 }
 0x6f1   : > { %1511 = vadd.xlane.f32.xlu0 %v1510_v10 }
 0x6f3   : > { %2195 = vmatpush3.bf16.msra.mxu1 %v2309_v20 }
 0x6f4   : > { %2196 = vmatprep.subr.bf16.mxu1 %v2436_v13 }
 0x6f7   : > { %2197 = vmatpush3.bf16.msra.mxu1 %v2310_v21 }
 0x6f8   : > { %2198 = vmatprep.subr.bf16.mxu1 %v2436_v13 }
 0x6fb   : > { %2199 = vmatpush3.bf16.msra.mxu1 %v2311_v23 }
 0x6fc   : > { %2200 = vmatprep.subr.bf16.mxu1 %v2436_v13 }
 0x6ff   : > { %2201 = vmatpush3.bf16.msra.mxu1 %v2312_v24 }
 0x700   : > { %2202 = vmatprep.subr.bf16.mxu1 %v2436_v13 }
 0x703   : > { %2203 = vmatpush3.bf16.msra.mxu1 %v2313_v25 }
 0x704   : > { %2204 = vmatprep.subr.bf16.mxu1 %v2436_v13 }
 0x707   : > { %2205 = vmatpush3.bf16.msra.mxu1 %v2314_v35 }
 0x708   : > { %2206 = vmatprep.subr.bf16.mxu1 %v2436_v13  ;;  %v2055_v13 = vld [vmem:[%s3028_s30] ss:$0 sm:$0xff] }
 0x70b   : > { %2207 = vmatpush3.bf16.msra.mxu1 %v2315_v36 }
 0x77e   : > { %v1512_v11 = vpop.xlane.xlu0 %1511 }
 0x77f   : > { %v1514_v12 = vmul.f32 0.03125, %v1512_v11 }
 0x781   : > { %v1515_v14 = vsub.f32 %v1507_v9, %v1514_v12 }
 0x783   : > { %v1516_v16 = vmul.f32 %v1515_v14, %v1515_v14 }
 0x785   : > { %v1517_v17 = vsel %vm930_vm5, %v1516_v16, 0.0 }
 0x786   : > { %1518 = vadd.xlane.f32.xlu1 %v1517_v17 }
 0x813   : > { %v1519_v26 = vpop.xlane.xlu1 %1518 }
 0x814   : > { %v1520_v27 = vmul.f32 0.03125, %v1519_v26 }
 0x816   : > { %v1521_v28 = vadd.f32 1e-05, %v1520_v27 }
 0x818   : > { %2332 = vrsqrt.f32 %v1521_v28 }
 0x822   : > { %v2333_v29 = vpop.eup %2332 }
 0x823   : > { %v1523_v30 = vmul.f32 %v2333_v29, %v1515_v14 }
 0x825   : > { %v1530_v32 = vmul.f32 %v2049_v22, %v1523_v30 }
 0x827   : > { %v1537_v33 = vadd.f32 %v2050_v31, %v1530_v32 }
 0x829   : > { %v1538_v34 = vpack.c.bf16 %v1537_v33, %v1537_v33 }
 0x82b   : > { %2189 = vmatmul.mubr.msk.bf16.vlgmr.msra.gmra.mrb[24].mxu0 %vm930_vm5, %v1538_v34 }
 0x8fe   : > { %v1599_v38 = vpop.f32.mrb[24].mxu0 }
 0x8ff   : > { %v1600_v39 = vadd.f32 %v2051_v37, %v1599_v38  ;;  %v2190_v40 = vpop.f32.mrb[25].mxu0 }
 0x900   : > { %v1602_v41 = vpop.f32.mrb[26].mxu0 }
 0x901   : > { %v1605_v42 = vmax.f32 %v1600_v39, 0.0  ;;  %v2191_v43 = vpop.f32.mrb[27].mxu0 }
 0x903   : > { %v1606_v44 = vpack.c.bf16 %v1605_v42, %v1605_v42 }
 0x905   : > { %2209 = vmatmul.mubr.bf16.vlgmr.msra.gmra.mrb[16].mxu1 %v1606_v44 }
 0x9d8   : > { %v1712_v45 = vpop.f32.mrb[16].mxu1 }
 0x9d9   : > { %v1713_v46 = vadd.f32 %v2055_v13, %v1712_v45  ;;  %v2210_v47 = vpop.f32.mrb[17].mxu1 }
 0x9da   : > { %v1715_v48 = vpop.f32.mrb[18].mxu1 }
 0x9db   : > { %v2211_v49 = vpop.f32.mrb[19].mxu1  ;;  %v1718_v50 = vadd.f32 %v1713_v46, %v1537_v33 }
 0x9dd   : > { %v1721_v51 = vsel %vm930_vm5, %v1718_v50, 0.0 }
 0x9de   : > { %1722 = vadd.xlane.f32.xlu0 %v1721_v51 }
 0xa6b   : > { %v1723_v52 = vpop.xlane.xlu0 %1722 }
 0xa6c   : > { %v1724_v53 = vmul.f32 0.03125, %v1723_v52 }
 0xa6e   : > { %v1725_v54 = vsub.f32 %v1718_v50, %v1724_v53 }
 0xa70   : > { %v1726_v55 = vmul.f32 %v1725_v54, %v1725_v54 }
 0xa72   : > { %v1727_v56 = vsel %vm930_vm5, %v1726_v55, 0.0 }
 0xa73   : > { %1728 = vadd.xlane.f32.xlu0 %v1727_v56 }
 0xb00   : > { %v1729_v57 = vpop.xlane.xlu0 %1728 }
 0xb01   : > { %v1730_v58 = vmul.f32 0.03125, %v1729_v57 }
 0xb03   : > { %v1731_v59 = vadd.f32 1e-05, %v1730_v58 }
 0xb05   : > { %2334 = vrsqrt.f32 %v1731_v59 }
 0xb0e   : > { %1752 = sbr.rel (%p2066_p1) target bundleno = 2839 (0xb17), region = 104 }
 0xb0f   : > { %v2335_v60 = vpop.eup %2334 }
 0xb10   : > { %v1733_v62 = vmul.f32 %v2335_v60, %v1725_v54 }
 0xb12   : > { %v1740_v0 = vmul.f32 %v2064_v61, %v1733_v62 }
 0xb14   : > { %v1747_v1 = vadd.f32 %v2065_v63, %v1740_v0 }
 0xb16   : > { %1753 = vst.msk [vmem:[%s2701_s12] sm:$0xff] %vm930_vm5, %v1747_v1 }
 0xb17 PF: > { %s3032_s27 = sld [smem:[#allocation8_spill]] }
 0xb1d   : > { %p2067_p2 = scmp.ne.s32.totalorder %s3032_s27, 1 }
 0xb1e   : > { %v1759_v2 = vsel (!%p2067_p2), %vm930_vm5, %v1747_v1, 0.0  ;;  %s3033_s25 = sld [smem:[#allocation32_spill]] (!%p2067_p2)  ;;  %s3034_s4 = sld [smem:[#allocation33_spill]] (!%p2067_p2) }
 0xb1f   : > { %1756 = sbr.rel (%p2067_p2) target bundleno = 3160 (0xc58), region = 108  ;;  %1760 = vadd.xlane.f32.xlu0 (!%p2067_p2), %v1759_v2 }
 0xb24   : > { %v2068_v12 = vld [vmem:[%s3033_s25] ss:$0 sm:$0xff] (!%p2067_p2) }
 0xb25   : > { %v2069_v16 = vld [vmem:[%s3034_s4] ss:$0 sm:$0xff] (!%p2067_p2) }
 0xbac   : > { %v1761_v3 = vpop.xlane.xlu0 %1760 }
 0xbad   : > { %v1762_v4 = vmul.f32 0.03125, %v1761_v3 }
 0xbaf   : > { %v1763_v5 = vsub.f32 %v1747_v1, %v1762_v4 }
 0xbb1   : > { %v1764_v6 = vmul.f32 %v1763_v5, %v1763_v5 }
 0xbb3   : > { %v1765_v7 = vsel %vm930_vm5, %v1764_v6, 0.0 }
 0xbb4   : > { %1766 = vadd.xlane.f32.xlu0 %v1765_v7 }
 0xc41   : > { %v1767_v8 = vpop.xlane.xlu0 %1766 }
 0xc42   : > { %v1768_v9 = vmul.f32 0.03125, %v1767_v8 }
 0xc44   : > { %v1769_v10 = vadd.f32 1e-05, %v1768_v9 }
 0xc46   : > { %2336 = vrsqrt.f32 %v1769_v10 }
 0xc50   : > { %v2337_v11 = vpop.eup %2336 }
 0xc51   : > { %v1771_v14 = vmul.f32 %v2337_v11, %v1763_v5 }
 0xc53   : > { %v1778_v17 = vmul.f32 %v2068_v12, %v1771_v14 }
 0xc55   : > { %v1785_v18 = vadd.f32 %v2069_v16, %v1778_v17 }
 0xc57   : > { %1786 = vst.msk [vmem:[%s2701_s12] sm:$0xff] %vm930_vm5, %v1785_v18 }
 0xc58 PF: > { %s3035_s1 = sld [smem:[#allocation9_spill]]  ;;  %s3036_s16 = sld [smem:[#allocation6_spill]] }
 0xc59   : > { %s3038_s5 = sld [smem:[#allocation34_spill]]  ;;  %s1801_s9 = sshll.u32 %s2701_s12, 4  ;;  %s1802_s9 = int_to_ptr.vmem [resolvable:$true] %s1801_s9 }
 0xc5a   : > { %s2338_s30 = scalar_lea.vmem %s1802_s9, 128  ;;  %s2452_s7 = smov [#allocation2]  }
 0xc5b   : > { %p2339_p4 = scmp.ne.s32.totalorder %s1802_s9, %s2338_s30  ;;  %s2342_s17 = sshll.u32 %s2452_s7, 4  ;;  %s2343_s17 = int_to_ptr.vmem [resolvable:$false] %s2342_s17 }
 0xc5c   : > { %s2344_s22 = scalar_lea.vmem %s2343_s17, 256  ;;  %p2345_p7 = scmp.lt.s32.totalorder %s1802_s9, %s2343_s17 }
 0xc5d   : > { %p2340_p5 = pnand %p2339_p4, %p2602_p3  ;;  %p2346_p8 = scmp.lt.s32.totalorder %s2344_s22, %s2338_s30 }
 0xc5e   : > { %s2071_s3 = sshll.u32 %s3035_s1, 7  ;;  %s3039_s24 = sand.u32 1, %s3036_s16  }
 0xc5f   : > { %s2887_s14 = scalar_lea.hbm %s3038_s5, %s2071_s3  ;;  %s1788_s0 = scalar_lea.sflag [#allocation3], %s3039_s24 }
 0xc60   : > { %p2341_p6 = pneg %p2340_p5  ;;  %p2347_p10 = por %p2346_p8, %p2345_p7 }
 0xc62   : > { %p2348_p11 = pnand %p2347_p10, %p2341_p6 }
 0xc64   : > { %2351 = shalt.err (!%p2348_p11)
}
 0xc65   : > { %s2352_s12 = scalar_lea.hbm %s2887_s14, 128  ;;  %s2356_s20 = scalar_lea.hbm %s3038_s5, 256 }
 0xc66   : > { %p2353_p12 = scmp.ne.s32.totalorder %s2887_s14, %s2352_s12  ;;  %p2357_p1 = scmp.lt.u32.totalorder %s2887_s14, %s3038_s5 }
 0xc67   : > { %p2358_p2 = scmp.lt.u32.totalorder %s2356_s20, %s2352_s12  ;;  %p2360_p5 = scmp.lt.u32.totalorder %s2352_s12, %s2887_s14 }
 0xc68   : > { %p2354_p13 = pnand %p2353_p12, %p2602_p3 }
 0xc69   : > { %p2359_p4 = por %p2358_p2, %p2357_p1 }
 0xc6a   : > { %p2355_p0 = pneg %p2354_p13 }
 0xc6b   : > { %p2361_p6 = por %p2360_p5, %p2359_p4 }
 0xc6d   : > { %p2362_p7 = pnand %p2361_p6, %p2355_p0 }
 0xc6f   : > { %2365 = shalt.err (!%p2362_p7)
}
 0xc70   : > { %2212 = dma.vmem_to_hbm [thread:$0]  (%p2602_p3), %s1802_s9, 128, %s2887_s14, %s1788_s0  }
 0xc71 PF: > { %s3040_s10 = sld [smem:[#allocation12_spill]]  ;;  %s3041_s29 = sld [smem:[#allocation5_spill]] }
 0xc77   : > { %p2218_p8 = scmp.ge.s32.totalorder %s3040_s10, 2  ;;  %s1813_s19 = sand.u32 1, %s3041_s29  }
 0xc78   : > { %s1814_s26 = scalar_lea.sflag [#allocation3], %s1813_s19 }
 0xc79   : > { %p2215_p10 = pnand %p2218_p8, %p2612_p9 }
 0xc7b   : > { %2399 = dma.done.wait (!%p2215_p10), %s1814_s26, 128  }
 0xc7c   : > { %2401 = vsyncadd (!%p2215_p10), %s1814_s26, 4294967168  ;;  %s32_s23 = sadd.s32 1, %s3040_s10   ;;  %s3043_s0 = sld [smem:[#allocation6_spill]] }
 0xc7d   : > { %p29_p11 = scmp.ge.s32.totalorder %s32_s23, 6   ;;  %s3044_s30 = sld [smem:[#allocation7_spill]] }
 0xc7e   : > { %s3045_s20 = sld [smem:[#allocation17_spill]]  ;;  %s3046_s21 = sld [smem:[#allocation10_spill]] }
 0xc7f   : > { %s3047_s1 = sld [smem:[#allocation11_spill]]  ;;  %s3048_s22 = sld [smem:[#allocation13_spill]] }
 0xc80   : > { %s3049_s2 = sld [smem:[#allocation15_spill]]  ;;  %31 = sbr.rel (!%p29_p11) target bundleno = 22 (0x16), region = 185 }
 0xc87   :  { %1819 = vsyncpa [#allocation3], 1 }
 0xc88   :  { %1821 = vsyncpa [#allocation3 + $0x1], 1 }

</bundles_post_ra>
